<compile_context>
chip_gen: v7x
topology: tpu7x:2x2x1
jax: 0.10.0
libtpu: 0.0.40
codegen_flags: <defaults>
</compile_context>

<pallas_src>
import functools

import jax
import jax.numpy as jnp
from jax.experimental import pallas as pl
from jax.experimental.pallas import tpu as pltpu

_PAD = 8            # guard sublanes around the conv1 scratch; never read unmasked
_MIB = 1024 * 1024


# ----------------------------------------------------------------------------
# Fused Bottleneck kernel: one grid step = one (batch, row-tile) block.
# ----------------------------------------------------------------------------
def _bottleneck_kernel(x_c_ref, x_t_ref, x_b_ref,
                       w1_ref, w2_ref, w3_ref,
                       b1_ref, b2_ref, b3_ref,
                       o_ref, mid_ref, *, rows, W, planes):
    r = pl.program_id(1)
    n_r = pl.num_programs(1)
    M = rows * W                 # flattened output pixels in this tile
    Mtot = (rows + 2) * W        # plus one halo image-row above and below

    # ---- stage 1: 1x1 conv (BN scale folded into w1) + bias + ReLU ----------
    xc = x_c_ref[...]            # (M, Cin) bf16, loaded once (conv1 lhs + residual)
    w1 = w1_ref[...]
    b1 = b1_ref[...]             # (1, planes) f32, loaded once

    def conv1(v):
        return jnp.maximum(
            jnp.dot(v, w1, preferred_element_type=jnp.float32) + b1, 0.0)

    # Invariant: only rows [_PAD, _PAD + Mtot) of mid_ref are written; the
    # _PAD guard sublanes stay uninitialised and every shifted read below that
    # can touch them is masked by the column-based jnp.where (a select, so
    # stale/non-finite guard data never propagates).
    mid_ref[pl.ds(_PAD + W, M), :] = conv1(xc)

    @pl.when(r > 0)
    def _():
        mid_ref[pl.ds(_PAD, W), :] = conv1(x_t_ref[...])

    @pl.when(r == 0)
    def _():
        mid_ref[pl.ds(_PAD, W), :] = jnp.zeros((W, planes), jnp.float32)

    @pl.when(r < n_r - 1)
    def _():
        mid_ref[pl.ds(_PAD + W + M, W), :] = conv1(x_b_ref[...])

    @pl.when(r == n_r - 1)
    def _():
        mid_ref[pl.ds(_PAD + W + M, W), :] = jnp.zeros((W, planes), jnp.float32)

    # ---- stage 2: 3x3 conv (pad=1, stride=1) as 3 matmuls with K = 3*planes -
    center = mid_ref[pl.ds(_PAD, Mtot), :]          # value at column w
    left = mid_ref[pl.ds(_PAD - 1, Mtot), :]        # value at column w-1
    right = mid_ref[pl.ds(_PAD + 1, Mtot), :]       # value at column w+1
    col = jax.lax.broadcasted_iota(jnp.int32, (Mtot, 1), 0) % W
    left = jnp.where(col > 0, left, 0.0)            # zero-pad at w == 0
    right = jnp.where(col < W - 1, right, 0.0)      # zero-pad at w == W-1

    acc = b2_ref[...]                               # (1, planes) f32, broadcasts
    for ky in range(3):                             # tap row above / at / below
        s = ky * W                                  # sublane-aligned (W % 8 == 0)
        lhs = jnp.concatenate(
            [left[s:s + M], center[s:s + M], right[s:s + M]],
            axis=1).astype(jnp.bfloat16)            # (M, 3*planes)
        acc = acc + jnp.dot(lhs, w2_ref[ky], preferred_element_type=jnp.float32)
    z = jnp.maximum(acc, 0.0).astype(jnp.bfloat16)

    # ---- stage 3: 1x1 expansion conv + bias + residual + ReLU ---------------
    out = jnp.dot(z, w3_ref[...], preferred_element_type=jnp.float32)
    out = out + b3_ref[...] + xc.astype(jnp.float32)
    o_ref[...] = jnp.maximum(out, 0.0).astype(o_ref.dtype)


# ----------------------------------------------------------------------------
# Host-side helpers
# ----------------------------------------------------------------------------
def _fold_bn(gamma, beta, mean, var, eps=1e-5):
    scale = gamma / jnp.sqrt(var + eps)
    return scale, beta - mean * scale


def _prepare_params(params):
    """Fold inference BN into the conv weights; weights bf16, biases f32."""
    planes = params["w1"].shape[1]
    cout = params["w3"].shape[1]
    s1, b1 = _fold_bn(*params["bn1"])
    s2, b2 = _fold_bn(*params["bn2"])
    s3, b3 = _fold_bn(*params["bn3"])
    w1f = (params["w1"] * s1[None, :]).astype(jnp.bfloat16)          # (Cin, planes)
    w2f = (params["w2"] * s2[None, None, None, :]).reshape(
        3, 3 * planes, planes).astype(jnp.bfloat16)                  # (ky, kx*cin, cout)
    w3f = (params["w3"] * s3[None, :]).astype(jnp.bfloat16)          # (planes, cout)
    return (w1f, w2f, w3f,
            b1.reshape(1, planes).astype(jnp.float32),
            b2.reshape(1, planes).astype(jnp.float32),
            b3.reshape(1, cout).astype(jnp.float32))


def _vmem_capacity_bytes():
    try:
        return int(pltpu.get_tpu_info().vmem_capacity_bytes)
    except Exception:
        return 64 * _MIB          # conservative fallback (v7x per-TensorCore VMEM)


def _pick_row_tile(H, W, Cin, planes, cout, requested, budget_bytes):
    """Largest divisor of H (<= requested) whose full per-step footprint fits."""
    cap = H if requested is None else max(1, min(int(requested), H))
    best = 1
    for rows in range(1, cap + 1):
        if H % rows:
            continue
        M, Mtot = rows * W, (rows + 2) * W
        # double-buffered DMA streams: bf16 center + 2 halos in, f32 tile out
        streams = 2 * (M * Cin * 2 + 2 * W * Cin * 2 + M * cout * 4)
        # resident weights (bf16, possibly double-buffered) + f32 biases
        weights = 2 * (2 * (Cin * planes + 9 * planes * planes + planes * cout)
                       + 4 * (2 * planes + cout))
        # conv1 scratch + shifted loads + per-ky lhs + conv2/3 temporaries (f32)
        temps = 4 * ((2 * _PAD + Mtot) * planes
                     + 3 * Mtot * planes
                     + 3 * M * planes
                     + 2 * M * planes)
        if streams + weights + temps <= budget_bytes:
            best = rows
    return best


# ----------------------------------------------------------------------------
# Public forward
# ----------------------------------------------------------------------------
def bottleneck_forward(x_nchw, params, block_rows=None):
    """Bottleneck(inplanes, planes) forward with stride=1, identity shortcut."""
    N, Cin, H, W = x_nchw.shape
    planes = params["w1"].shape[1]
    cout = params["w3"].shape[1]
    assert cout == Cin, "identity shortcut requires inplanes == planes * 4"
    assert W % 8 == 0, "TODO(synk): width-padding path for W % 8 != 0"

    w1f, w2f, w3f, b1, b2, b3 = _prepare_params(params)

    # NCHW -> flattened [N*H*W, C] with channels on the lane axis; bf16 stream.
    x2d = jnp.transpose(x_nchw, (0, 2, 3, 1)).reshape(N * H * W, Cin)
    x2d = x2d.astype(jnp.bfloat16)

    vmem_cap = _vmem_capacity_bytes()
    vmem_limit = max(min(vmem_cap * 3 // 4, vmem_cap - 16 * _MIB), 32 * _MIB)
    rows = _pick_row_tile(H, W, Cin, planes, cout, block_rows,
                          (vmem_limit * 3) // 4)
    n_r = H // rows
    M = rows * W

    kernel = functools.partial(_bottleneck_kernel, rows=rows, W=W, planes=planes)

    out2d = pl.pallas_call(
        kernel,
        out_shape=jax.ShapeDtypeStruct((N * H * W, cout), x_nchw.dtype),
        grid=(N, n_r),
        in_specs=[
            # center row-tile (conv1 input + residual)
            pl.BlockSpec((M, Cin), lambda n, r: (n * n_r + r, 0)),
            # one halo image-row above / below (clamped at image borders;
            # the kernel writes zeros there instead)
            pl.BlockSpec((W, Cin),
                         lambda n, r: (jnp.maximum(n * H + r * rows - 1, n * H), 0)),
            pl.BlockSpec((W, Cin),
                         lambda n, r: (jnp.minimum(n * H + (r + 1) * rows,
                                                   n * H + H - 1), 0)),
            # weights (BN folded, bf16) + f32 biases, grid-invariant
            pl.BlockSpec((Cin, planes), lambda n, r: (0, 0)),
            pl.BlockSpec((3, 3 * planes, planes), lambda n, r: (0, 0, 0)),
            pl.BlockSpec((planes, cout), lambda n, r: (0, 0)),
            pl.BlockSpec((1, planes), lambda n, r: (0, 0)),
            pl.BlockSpec((1, planes), lambda n, r: (0, 0)),
            pl.BlockSpec((1, cout), lambda n, r: (0, 0)),
        ],
        out_specs=pl.BlockSpec((M, cout), lambda n, r: (n * n_r + r, 0)),
        scratch_shapes=[
            pltpu.VMEM((2 * _PAD + (rows + 2) * W, planes), jnp.float32),
        ],
        compiler_params=pltpu.CompilerParams(
            dimension_semantics=("parallel", "parallel"),
            vmem_limit_bytes=int(vmem_limit)),
    )(x2d, x2d, x2d, w1f, w2f, w3f, b1, b2, b3)

    out = out2d.reshape(N, H, W, cout)
    return jnp.transpose(out, (0, 3, 1, 2))


# ----------------------------------------------------------------------------
# Pure-JAX reference with matched numerics (bf16 matmuls, f32 accumulation)
# ----------------------------------------------------------------------------
def bottleneck_ref(x_nchw, params):
    planes = params["w1"].shape[1]
    w1f, w2f, w3f, b1, b2, b3 = _prepare_params(params)

    w1_oihw = jnp.transpose(w1f, (1, 0))[:, :, None, None]
    w2_oihw = jnp.transpose(w2f.reshape(3, 3, planes, planes), (3, 2, 0, 1))
    w3_oihw = jnp.transpose(w3f, (1, 0))[:, :, None, None]

    def conv(v, w, pad=0):
        return jax.lax.conv_general_dilated(
            v, w, (1, 1), [(pad, pad), (pad, pad)],
            dimension_numbers=("NCHW", "OIHW", "NCHW"),
            preferred_element_type=jnp.float32)

    def nchw(b):
        return b.reshape(1, -1, 1, 1)

    xb = x_nchw.astype(jnp.bfloat16)
    o = jnp.maximum(conv(xb, w1_oihw) + nchw(b1), 0.0)
    o = jnp.maximum(conv(o.astype(jnp.bfloat16), w2_oihw, pad=1) + nchw(b2), 0.0)
    o = conv(o.astype(jnp.bfloat16), w3_oihw) + nchw(b3) + xb.astype(jnp.float32)
    return jnp.maximum(o, 0.0)


if __name__ == "__main__":
    key = jax.random.PRNGKey(0)
    N, H, W = 2, 16, 16
    planes = 4
    inplanes = planes * 4          # identity shortcut: no downsample needed

    ks = jax.random.split(key, 8)
    params = {
        # conv weights stored as (Cin, Cout) for 1x1 and (3,3,Cin,Cout) for 3x3
        "w1": 0.1 * jax.random.normal(ks[0], (inplanes, planes), jnp.float32),
        "w2": 0.1 * jax.random.normal(ks[1], (3, 3, planes, planes), jnp.float32),
        "w3": 0.1 * jax.random.normal(ks[2], (planes, planes * 4), jnp.float32),
        # BN params: (gamma, beta, running_mean, running_var) — inference mode
        "bn1": (1.0 + 0.1 * jax.random.normal(ks[3], (planes,), jnp.float32),
                0.1 * jax.random.normal(ks[4], (planes,), jnp.float32),
                jnp.zeros((planes,), jnp.float32),
                jnp.ones((planes,), jnp.float32)),
        "bn2": (1.0 + 0.1 * jax.random.normal(ks[5], (planes,), jnp.float32),
                0.1 * jax.random.normal(ks[6], (planes,), jnp.float32),
                jnp.zeros((planes,), jnp.float32),
                jnp.ones((planes,), jnp.float32)),
        "bn3": (jnp.ones((planes * 4,), jnp.float32),
                0.1 * jax.random.normal(ks[7], (planes * 4,), jnp.float32),
                jnp.zeros((planes * 4,), jnp.float32),
                jnp.ones((planes * 4,), jnp.float32)),
    }

    x = jax.random.normal(key, (N, inplanes, H, W), jnp.float32)
    ref = jax.block_until_ready(bottleneck_ref(x, params))

    # Exercise both the halo path (two row-tiles / image) and whole-image tiles.
    for rows in (8, None):
        fwd = jax.jit(functools.partial(bottleneck_forward, block_rows=rows))
        out = jax.block_until_ready(fwd(x, params))
        assert out.shape == (N, planes * 4, H, W)
        assert jnp.allclose(out, ref, atol=1e-2, rtol=1e-2), \
            f"mismatch vs reference (block_rows={rows})"

    print("KERNEL_OK")
</pallas_src>

<mosaic_0001>
module attributes {stable_mosaic.version = 11 : i64} {
  func.func @_bottleneck_kernel(%arg0: i32, %arg1: i32, %arg2: memref<128x16xbf16, #tpu.memory_space<vmem>>, %arg3: memref<16x16xbf16, #tpu.memory_space<vmem>>, %arg4: memref<16x16xbf16, #tpu.memory_space<vmem>>, %arg5: memref<16x4xbf16, #tpu.memory_space<vmem>>, %arg6: memref<3x12x4xbf16, #tpu.memory_space<vmem>>, %arg7: memref<4x16xbf16, #tpu.memory_space<vmem>>, %arg8: memref<1x4xf32, #tpu.memory_space<vmem>>, %arg9: memref<1x4xf32, #tpu.memory_space<vmem>>, %arg10: memref<1x16xf32, #tpu.memory_space<vmem>>, %arg11: memref<128x16xf32, #tpu.memory_space<vmem>>, %arg12: memref<176x4xf32, #tpu.memory_space<vmem>>) attributes {dimension_semantics = [#tpu.dimension_semantics<parallel>, #tpu.dimension_semantics<parallel>], iteration_bounds = array<i64: 2, 2>, scalar_prefetch = 0 : i64, scratch_operands = 1 : i64, tpu.core_type = #tpu.core_type<tc>, window_params = [{transform_indices = @transform_0, window_bounds = array<i64: 128, 16>}, {transform_indices = @transform_1, window_bounds = array<i64: 16, 16>}, {transform_indices = @transform_2, window_bounds = array<i64: 16, 16>}, {pipeline_mode = #tpu.pipeline_mode<synchronous>, transform_indices = @transform_3, window_bounds = array<i64: 16, 4>}, {pipeline_mode = #tpu.pipeline_mode<synchronous>, transform_indices = @transform_4, window_bounds = array<i64: 3, 12, 4>}, {pipeline_mode = #tpu.pipeline_mode<synchronous>, transform_indices = @transform_5, window_bounds = array<i64: 4, 16>}, {pipeline_mode = #tpu.pipeline_mode<synchronous>, transform_indices = @transform_6, window_bounds = array<i64: 1, 4>}, {pipeline_mode = #tpu.pipeline_mode<synchronous>, transform_indices = @transform_7, window_bounds = array<i64: 1, 4>}, {pipeline_mode = #tpu.pipeline_mode<synchronous>, transform_indices = @transform_8, window_bounds = array<i64: 1, 16>}, {transform_indices = @transform_9, window_bounds = array<i64: 128, 16>}]} {
    %c0 = arith.constant 0 : index
    %c0_0 = arith.constant 0 : index
    %0 = vector.load %arg2[%c0, %c0_0] : memref<128x16xbf16, #tpu.memory_space<vmem>>, vector<128x16xbf16>
    %c0_1 = arith.constant 0 : index
    %c0_2 = arith.constant 0 : index
    %1 = vector.load %arg5[%c0_1, %c0_2] : memref<16x4xbf16, #tpu.memory_space<vmem>>, vector<16x4xbf16>
    %c0_3 = arith.constant 0 : index
    %c0_4 = arith.constant 0 : index
    %2 = vector.load %arg8[%c0_3, %c0_4] : memref<1x4xf32, #tpu.memory_space<vmem>>, vector<1x4xf32>
    %cst = arith.constant dense<0.000000e+00> : vector<128x4xf32>
    %3 = tpu.matmul %0, %1, %cst {dimension_numbers = #tpu.dot_dimension_numbers<[1], [0], [0], [1], [0, 0, 1, 1], [], []>} : vector<128x16xbf16>, vector<16x4xbf16>, vector<128x4xf32> -> vector<128x4xf32>
    %4 = vector.broadcast %2 : vector<1x4xf32> to vector<128x4xf32>
    %5 = arith.addf %3, %4 : vector<128x4xf32>
    %cst_5 = arith.constant 0.000000e+00 : f32
    %6 = vector.broadcast %cst_5 : f32 to vector<128x4xf32>
    %7 = arith.maximumf %5, %6 : vector<128x4xf32>
    %c24 = arith.constant 24 : index
    %c0_6 = arith.constant 0 : index
    %8 = vector.load %arg12[%c24, %c0_6] : memref<176x4xf32, #tpu.memory_space<vmem>>, vector<128x4xf32>
    tpu.vector_store %arg12[%c24, %c0_6], %7 {strides = array<i32>} : memref<176x4xf32, #tpu.memory_space<vmem>>, vector<128x4xf32>,
    %c0_i32 = arith.constant 0 : i32
    %9 = arith.cmpi sgt, %arg1, %c0_i32 : i32
    %10 = arith.extui %9 : i1 to i32
    %c0_i32_7 = arith.constant 0 : i32
    %11 = arith.cmpi ne, %10, %c0_i32_7 : i32
    scf.if %11 {
      %c0_45 = arith.constant 0 : index
      %c0_46 = arith.constant 0 : index
      %95 = vector.load %arg3[%c0_45, %c0_46] : memref<16x16xbf16, #tpu.memory_space<vmem>>, vector<16x16xbf16>
      %cst_47 = arith.constant dense<0.000000e+00> : vector<16x4xf32>
      %96 = tpu.matmul %95, %1, %cst_47 {dimension_numbers = #tpu.dot_dimension_numbers<[1], [0], [0], [1], [0, 0, 1, 1], [], []>} : vector<16x16xbf16>, vector<16x4xbf16>, vector<16x4xf32> -> vector<16x4xf32>
      %97 = vector.broadcast %2 : vector<1x4xf32> to vector<16x4xf32>
      %98 = arith.addf %96, %97 : vector<16x4xf32>
      %cst_48 = arith.constant 0.000000e+00 : f32
      %99 = vector.broadcast %cst_48 : f32 to vector<16x4xf32>
      %100 = arith.maximumf %98, %99 : vector<16x4xf32>
      %c8_49 = arith.constant 8 : index
      %c0_50 = arith.constant 0 : index
      %101 = vector.load %arg12[%c8_49, %c0_50] : memref<176x4xf32, #tpu.memory_space<vmem>>, vector<16x4xf32>
      tpu.vector_store %arg12[%c8_49, %c0_50], %100 {strides = array<i32>} : memref<176x4xf32, #tpu.memory_space<vmem>>, vector<16x4xf32>,
    } else {
    }
    %c0_i32_8 = arith.constant 0 : i32
    %12 = arith.cmpi eq, %arg1, %c0_i32_8 : i32
    %13 = arith.extui %12 : i1 to i32
    %c0_i32_9 = arith.constant 0 : i32
    %14 = arith.cmpi ne, %13, %c0_i32_9 : i32
    scf.if %14 {
      %cst_45 = arith.constant 0.000000e+00 : f32
      %95 = vector.broadcast %cst_45 : f32 to vector<16x4xf32>
      %c8_46 = arith.constant 8 : index
      %c0_47 = arith.constant 0 : index
      %96 = vector.load %arg12[%c8_46, %c0_47] : memref<176x4xf32, #tpu.memory_space<vmem>>, vector<16x4xf32>
      tpu.vector_store %arg12[%c8_46, %c0_47], %95 {strides = array<i32>} : memref<176x4xf32, #tpu.memory_space<vmem>>, vector<16x4xf32>,
    } else {
    }
    %c1_i32 = arith.constant 1 : i32
    %15 = arith.cmpi slt, %arg1, %c1_i32 : i32
    %16 = arith.extui %15 : i1 to i32
    %c0_i32_10 = arith.constant 0 : i32
    %17 = arith.cmpi ne, %16, %c0_i32_10 : i32
    scf.if %17 {
      %c0_45 = arith.constant 0 : index
      %c0_46 = arith.constant 0 : index
      %95 = vector.load %arg4[%c0_45, %c0_46] : memref<16x16xbf16, #tpu.memory_space<vmem>>, vector<16x16xbf16>
      %cst_47 = arith.constant dense<0.000000e+00> : vector<16x4xf32>
      %96 = tpu.matmul %95, %1, %cst_47 {dimension_numbers = #tpu.dot_dimension_numbers<[1], [0], [0], [1], [0, 0, 1, 1], [], []>} : vector<16x16xbf16>, vector<16x4xbf16>, vector<16x4xf32> -> vector<16x4xf32>
      %97 = vector.broadcast %2 : vector<1x4xf32> to vector<16x4xf32>
      %98 = arith.addf %96, %97 : vector<16x4xf32>
      %cst_48 = arith.constant 0.000000e+00 : f32
      %99 = vector.broadcast %cst_48 : f32 to vector<16x4xf32>
      %100 = arith.maximumf %98, %99 : vector<16x4xf32>
      %c152 = arith.constant 152 : index
      %c0_49 = arith.constant 0 : index
      %101 = vector.load %arg12[%c152, %c0_49] : memref<176x4xf32, #tpu.memory_space<vmem>>, vector<16x4xf32>
      tpu.vector_store %arg12[%c152, %c0_49], %100 {strides = array<i32>} : memref<176x4xf32, #tpu.memory_space<vmem>>, vector<16x4xf32>,
    } else {
    }
    %c1_i32_11 = arith.constant 1 : i32
    %18 = arith.cmpi eq, %arg1, %c1_i32_11 : i32
    %19 = arith.extui %18 : i1 to i32
    %c0_i32_12 = arith.constant 0 : i32
    %20 = arith.cmpi ne, %19, %c0_i32_12 : i32
    scf.if %20 {
      %cst_45 = arith.constant 0.000000e+00 : f32
      %95 = vector.broadcast %cst_45 : f32 to vector<16x4xf32>
      %c152 = arith.constant 152 : index
      %c0_46 = arith.constant 0 : index
      %96 = vector.load %arg12[%c152, %c0_46] : memref<176x4xf32, #tpu.memory_space<vmem>>, vector<16x4xf32>
      tpu.vector_store %arg12[%c152, %c0_46], %95 {strides = array<i32>} : memref<176x4xf32, #tpu.memory_space<vmem>>, vector<16x4xf32>,
    } else {
    }
    %c8 = arith.constant 8 : index
    %c0_13 = arith.constant 0 : index
    %21 = vector.load %arg12[%c8, %c0_13] : memref<176x4xf32, #tpu.memory_space<vmem>>, vector<160x4xf32>
    %c7 = arith.constant 7 : index
    %c0_14 = arith.constant 0 : index
    %22 = vector.load %arg12[%c7, %c0_14] : memref<176x4xf32, #tpu.memory_space<vmem>>, vector<160x4xf32>
    %c9 = arith.constant 9 : index
    %c0_15 = arith.constant 0 : index
    %23 = vector.load %arg12[%c9, %c0_15] : memref<176x4xf32, #tpu.memory_space<vmem>>, vector<160x4xf32>
    %24 = tpu.iota {dimensions = array<i32: 0>} : vector<160x1xi32>
    %c16_i32 = arith.constant 16 : i32
    %c0_i32_16 = arith.constant 0 : i32
    %25 = arith.cmpi eq, %c16_i32, %c0_i32_16 : i32
    %c1_i32_17 = arith.constant 1 : i32
    %26 = arith.select %25, %c1_i32_17, %c16_i32 : i32
    %27 = vector.broadcast %26 : i32 to vector<160x1xi32>
    %28 = arith.remsi %24, %27 : vector<160x1xi32>
    %c0_i32_18 = arith.constant 0 : i32
    %29 = vector.broadcast %c0_i32_18 : i32 to vector<160x1xi32>
    %30 = arith.cmpi ne, %28, %29 : vector<160x1xi32>
    %c0_i32_19 = arith.constant 0 : i32
    %31 = vector.broadcast %c0_i32_19 : i32 to vector<160x1xi32>
    %32 = arith.cmpi slt, %28, %31 : vector<160x1xi32>
    %c0_i32_20 = arith.constant 0 : i32
    %33 = arith.cmpi slt, %26, %c0_i32_20 : i32
    %34 = vector.broadcast %33 : i1 to vector<160x1xi1>
    %35 = vector.broadcast %34 : vector<160x1xi1> to vector<160x1xi1>
    %36 = arith.xori %32, %35 : vector<160x1xi1>
    %37 = arith.andi %36, %30 : vector<160x1xi1>
    %38 = vector.broadcast %26 : i32 to vector<160x1xi32>
    %39 = arith.addi %28, %38 : vector<160x1xi32>
    %40 = arith.select %37, %39, %28 : vector<160x1xi1>, vector<160x1xi32>
    %c0_i32_21 = arith.constant 0 : i32
    %41 = vector.broadcast %c0_i32_21 : i32 to vector<160x1xi32>
    %42 = arith.cmpi sgt, %40, %41 : vector<160x1xi32>
    %cst_22 = arith.constant 0.000000e+00 : f32
    %43 = vector.shape_cast %42 : vector<160x1xi1> to vector<160x1xi1>
    %44 = vector.broadcast %43 : vector<160x1xi1> to vector<160x4xi1>
    %45 = vector.broadcast %cst_22 : f32 to vector<160x4xf32>
    %46 = arith.select %44, %22, %45 : vector<160x4xi1>, vector<160x4xf32>
    %c15_i32 = arith.constant 15 : i32
    %47 = vector.broadcast %c15_i32 : i32 to vector<160x1xi32>
    %48 = arith.cmpi slt, %40, %47 : vector<160x1xi32>
    %cst_23 = arith.constant 0.000000e+00 : f32
    %49 = vector.shape_cast %48 : vector<160x1xi1> to vector<160x1xi1>
    %50 = vector.broadcast %49 : vector<160x1xi1> to vector<160x4xi1>
    %51 = vector.broadcast %cst_23 : f32 to vector<160x4xf32>
    %52 = arith.select %50, %23, %51 : vector<160x4xi1>, vector<160x4xf32>
    %c0_24 = arith.constant 0 : index
    %c0_25 = arith.constant 0 : index
    %53 = vector.load %arg9[%c0_24, %c0_25] : memref<1x4xf32, #tpu.memory_space<vmem>>, vector<1x4xf32>
    %54 = vector.extract_strided_slice %46 {offsets = [0, 0], sizes = [128, 4], strides = [1, 1]} : vector<160x4xf32> to vector<128x4xf32>
    %55 = vector.extract_strided_slice %21 {offsets = [0, 0], sizes = [128, 4], strides = [1, 1]} : vector<160x4xf32> to vector<128x4xf32>
    %56 = vector.extract_strided_slice %52 {offsets = [0, 0], sizes = [128, 4], strides = [1, 1]} : vector<160x4xf32> to vector<128x4xf32>
    %57 = tpu.concatenate %54, %55, %56 in 1 : vector<128x4xf32>, vector<128x4xf32>, vector<128x4xf32> -> vector<128x12xf32>
    %58 = arith.truncf %57 : vector<128x12xf32> to vector<128x12xbf16>
    %c0_26 = arith.constant 0 : index
    %c0_27 = arith.constant 0 : index
    %c0_28 = arith.constant 0 : index
    %59 = vector.load %arg6[%c0_26, %c0_27, %c0_28] : memref<3x12x4xbf16, #tpu.memory_space<vmem>>, vector<1x12x4xbf16>
    %60 = vector.shape_cast %59 : vector<1x12x4xbf16> to vector<12x4xbf16>
    %cst_29 = arith.constant dense<0.000000e+00> : vector<128x4xf32>
    %61 = tpu.matmul %58, %60, %cst_29 {dimension_numbers = #tpu.dot_dimension_numbers<[1], [0], [0], [1], [0, 0, 1, 1], [], []>} : vector<128x12xbf16>, vector<12x4xbf16>, vector<128x4xf32> -> vector<128x4xf32>
    %62 = vector.broadcast %53 : vector<1x4xf32> to vector<128x4xf32>
    %63 = arith.addf %62, %61 : vector<128x4xf32>
    %64 = vector.extract_strided_slice %46 {offsets = [16, 0], sizes = [128, 4], strides = [1, 1]} : vector<160x4xf32> to vector<128x4xf32>
    %65 = vector.extract_strided_slice %21 {offsets = [16, 0], sizes = [128, 4], strides = [1, 1]} : vector<160x4xf32> to vector<128x4xf32>
    %66 = vector.extract_strided_slice %52 {offsets = [16, 0], sizes = [128, 4], strides = [1, 1]} : vector<160x4xf32> to vector<128x4xf32>
    %67 = tpu.concatenate %64, %65, %66 in 1 : vector<128x4xf32>, vector<128x4xf32>, vector<128x4xf32> -> vector<128x12xf32>
    %68 = arith.truncf %67 : vector<128x12xf32> to vector<128x12xbf16>
    %c1 = arith.constant 1 : index
    %c0_30 = arith.constant 0 : index
    %c0_31 = arith.constant 0 : index
    %69 = vector.load %arg6[%c1, %c0_30, %c0_31] : memref<3x12x4xbf16, #tpu.memory_space<vmem>>, vector<1x12x4xbf16>
    %70 = vector.shape_cast %69 : vector<1x12x4xbf16> to vector<12x4xbf16>
    %cst_32 = arith.constant dense<0.000000e+00> : vector<128x4xf32>
    %71 = tpu.matmul %68, %70, %cst_32 {dimension_numbers = #tpu.dot_dimension_numbers<[1], [0], [0], [1], [0, 0, 1, 1], [], []>} : vector<128x12xbf16>, vector<12x4xbf16>, vector<128x4xf32> -> vector<128x4xf32>
    %72 = arith.addf %63, %71 : vector<128x4xf32>
    %73 = vector.extract_strided_slice %46 {offsets = [32, 0], sizes = [128, 4], strides = [1, 1]} : vector<160x4xf32> to vector<128x4xf32>
    %74 = vector.extract_strided_slice %21 {offsets = [32, 0], sizes = [128, 4], strides = [1, 1]} : vector<160x4xf32> to vector<128x4xf32>
    %75 = vector.extract_strided_slice %52 {offsets = [32, 0], sizes = [128, 4], strides = [1, 1]} : vector<160x4xf32> to vector<128x4xf32>
    %76 = tpu.concatenate %73, %74, %75 in 1 : vector<128x4xf32>, vector<128x4xf32>, vector<128x4xf32> -> vector<128x12xf32>
    %77 = arith.truncf %76 : vector<128x12xf32> to vector<128x12xbf16>
    %c2 = arith.constant 2 : index
    %c0_33 = arith.constant 0 : index
    %c0_34 = arith.constant 0 : index
    %78 = vector.load %arg6[%c2, %c0_33, %c0_34] : memref<3x12x4xbf16, #tpu.memory_space<vmem>>, vector<1x12x4xbf16>
    %79 = vector.shape_cast %78 : vector<1x12x4xbf16> to vector<12x4xbf16>
    %cst_35 = arith.constant dense<0.000000e+00> : vector<128x4xf32>
    %80 = tpu.matmul %77, %79, %cst_35 {dimension_numbers = #tpu.dot_dimension_numbers<[1], [0], [0], [1], [0, 0, 1, 1], [], []>} : vector<128x12xbf16>, vector<12x4xbf16>, vector<128x4xf32> -> vector<128x4xf32>
    %81 = arith.addf %72, %80 : vector<128x4xf32>
    %cst_36 = arith.constant 0.000000e+00 : f32
    %82 = vector.broadcast %cst_36 : f32 to vector<128x4xf32>
    %83 = arith.maximumf %81, %82 : vector<128x4xf32>
    %84 = arith.truncf %83 : vector<128x4xf32> to vector<128x4xbf16>
    %c0_37 = arith.constant 0 : index
    %c0_38 = arith.constant 0 : index
    %85 = vector.load %arg7[%c0_37, %c0_38] : memref<4x16xbf16, #tpu.memory_space<vmem>>, vector<4x16xbf16>
    %cst_39 = arith.constant dense<0.000000e+00> : vector<128x16xf32>
    %86 = tpu.matmul %84, %85, %cst_39 {dimension_numbers = #tpu.dot_dimension_numbers<[1], [0], [0], [1], [0, 0, 1, 1], [], []>} : vector<128x4xbf16>, vector<4x16xbf16>, vector<128x16xf32> -> vector<128x16xf32>
    %c0_40 = arith.constant 0 : index
    %c0_41 = arith.constant 0 : index
    %87 = vector.load %arg10[%c0_40, %c0_41] : memref<1x16xf32, #tpu.memory_space<vmem>>, vector<1x16xf32>
    %88 = vector.broadcast %87 : vector<1x16xf32> to vector<128x16xf32>
    %89 = arith.addf %86, %88 : vector<128x16xf32>
    %90 = arith.extf %0 : vector<128x16xbf16> to vector<128x16xf32>
    %91 = arith.addf %89, %90 : vector<128x16xf32>
    %cst_42 = arith.constant 0.000000e+00 : f32
    %92 = vector.broadcast %cst_42 : f32 to vector<128x16xf32>
    %93 = arith.maximumf %91, %92 : vector<128x16xf32>
    %c0_43 = arith.constant 0 : index
    %c0_44 = arith.constant 0 : index
    %94 = vector.load %arg11[%c0_43, %c0_44] : memref<128x16xf32, #tpu.memory_space<vmem>>, vector<128x16xf32>
    tpu.vector_store %arg11[%c0_43, %c0_44], %93 {strides = array<i32>} : memref<128x16xf32, #tpu.memory_space<vmem>>, vector<128x16xf32>,
    return
  }
  func.func @transform_0(%arg0: i32, %arg1: i32) -> (i32, i32) {
    %c2_i32 = arith.constant 2 : i32
    %0 = arith.muli %arg0, %c2_i32 : i32
    %1 = arith.addi %0, %arg1 : i32
    %c0_i32 = arith.constant 0 : i32
    %c0_i32_0 = arith.constant 0 : i32
    return %1, %c0_i32 : i32, i32
  }
  func.func @transform_1(%arg0: i32, %arg1: i32) -> (i32, i32) {
    %c16_i32 = arith.constant 16 : i32
    %0 = arith.muli %arg0, %c16_i32 : i32
    %c8_i32 = arith.constant 8 : i32
    %1 = arith.muli %arg1, %c8_i32 : i32
    %2 = arith.addi %0, %1 : i32
    %c1_i32 = arith.constant 1 : i32
    %3 = arith.subi %2, %c1_i32 : i32
    %c16_i32_0 = arith.constant 16 : i32
    %4 = arith.muli %arg0, %c16_i32_0 : i32
    %5 = arith.maxsi %3, %4 : i32
    %c0_i32 = arith.constant 0 : i32
    %c0_i32_1 = arith.constant 0 : i32
    return %5, %c0_i32 : i32, i32
  }
  func.func @transform_2(%arg0: i32, %arg1: i32) -> (i32, i32) {
    %c16_i32 = arith.constant 16 : i32
    %0 = arith.muli %arg0, %c16_i32 : i32
    %c1_i32 = arith.constant 1 : i32
    %1 = arith.addi %arg1, %c1_i32 : i32
    %c8_i32 = arith.constant 8 : i32
    %2 = arith.muli %1, %c8_i32 : i32
    %3 = arith.addi %0, %2 : i32
    %c16_i32_0 = arith.constant 16 : i32
    %4 = arith.muli %arg0, %c16_i32_0 : i32
    %c16_i32_1 = arith.constant 16 : i32
    %5 = arith.addi %4, %c16_i32_1 : i32
    %c1_i32_2 = arith.constant 1 : i32
    %6 = arith.subi %5, %c1_i32_2 : i32
    %7 = arith.minsi %3, %6 : i32
    %c0_i32 = arith.constant 0 : i32
    %c0_i32_3 = arith.constant 0 : i32
    return %7, %c0_i32 : i32, i32
  }
  func.func @transform_3(%arg0: i32, %arg1: i32) -> (i32, i32) {
    %c0_i32 = arith.constant 0 : i32
    %c0_i32_0 = arith.constant 0 : i32
    %c0_i32_1 = arith.constant 0 : i32
    return %c0_i32, %c0_i32_0 : i32, i32
  }
  func.func @transform_4(%arg0: i32, %arg1: i32) -> (i32, i32, i32) {
    %c0_i32 = arith.constant 0 : i32
    %c0_i32_0 = arith.constant 0 : i32
    %c0_i32_1 = arith.constant 0 : i32
    %c0_i32_2 = arith.constant 0 : i32
    return %c0_i32, %c0_i32_0, %c0_i32_1 : i32, i32, i32
  }
  func.func @transform_5(%arg0: i32, %arg1: i32) -> (i32, i32) {
    %c0_i32 = arith.constant 0 : i32
    %c0_i32_0 = arith.constant 0 : i32
    %c0_i32_1 = arith.constant 0 : i32
    return %c0_i32, %c0_i32_0 : i32, i32
  }
  func.func @transform_6(%arg0: i32, %arg1: i32) -> (i32, i32) {
    %c0_i32 = arith.constant 0 : i32
    %c0_i32_0 = arith.constant 0 : i32
    %c0_i32_1 = arith.constant 0 : i32
    return %c0_i32, %c0_i32_0 : i32, i32
  }
  func.func @transform_7(%arg0: i32, %arg1: i32) -> (i32, i32) {
    %c0_i32 = arith.constant 0 : i32
    %c0_i32_0 = arith.constant 0 : i32
    %c0_i32_1 = arith.constant 0 : i32
    return %c0_i32, %c0_i32_0 : i32, i32
  }
  func.func @transform_8(%arg0: i32, %arg1: i32) -> (i32, i32) {
    %c0_i32 = arith.constant 0 : i32
    %c0_i32_0 = arith.constant 0 : i32
    %c0_i32_1 = arith.constant 0 : i32
    return %c0_i32, %c0_i32_0 : i32, i32
  }
  func.func @transform_9(%arg0: i32, %arg1: i32) -> (i32, i32) {
    %c2_i32 = arith.constant 2 : i32
    %0 = arith.muli %arg0, %c2_i32 : i32
    %1 = arith.addi %0, %arg1 : i32
    %c0_i32 = arith.constant 0 : i32
    %c0_i32_0 = arith.constant 0 : i32
    return %1, %c0_i32 : i32, i32
  }
}

</mosaic_0001>

<bundles_post_ra>
// kernel: bottleneck_forward.1
= control target key start
LH: loop header
LB: loop body
LE: loop exit
PB: predicated region body
PF: predicated region fallthrough
CT: control target
= control target key end

     0   :  { %s2867_s30 = smov 0   ;;  %s2869_s10 = smov 0   ;;  %s3374_s0 = inlined_call_operand.vmem [shape: bf16[512,16], index: 0, kind: input, shape index: {}, may-alias: {0,1,2}]   ;;  %s3375_s1 = inlined_call_operand.vmem [shape: bf16[512,16], index: 1, kind: input, shape index: {}, may-alias: {0,1,2}]   ;;  %s3376_s2 = inlined_call_operand.vmem [shape: bf16[512,16], index: 2, kind: input, shape index: {}, may-alias: {0,1,2}]   ;;  %s3377_s3 = inlined_call_operand.vmem [shape: bf16[16,4], index: 3, kind: input, shape index: {}]   ;;  %s3378_s4 = inlined_call_operand.vmem [shape: bf16[3,12,4], index: 4, kind: input, shape index: {}]   ;;  %s3379_s5 = inlined_call_operand.vmem [shape: bf16[4,16], index: 5, kind: input, shape index: {}]   ;;  %s3380_s6 = inlined_call_operand.vmem [shape: f32[1,4], index: 6, kind: input, shape index: {}]   ;;  %s3381_s7 = inlined_call_operand.vmem [shape: f32[1,4], index: 7, kind: input, shape index: {}]   ;;  %s3382_s8 = inlined_call_operand.vmem [shape: f32[1,16], index: 8, kind: input, shape index: {}]   ;;  %s3383_s9 = inlined_call_operand.vmem [shape: f32[512,16], index: 9, kind: output, shape index: {}]  }
   0x1   :  { %3384 = sst [smem:[#allocation5_spill]] %s3377_s3  ;;  %s2871_s11 = smov 0  }
   0x2   :  { %s2873_s12 = smov 0   ;;  %s2875_s13 = smov 0  }
   0x3 LB: > { %s28_s14 = sadd.s32 1, %s2799_s11  ;;  %s31_s15 = sadd.s32 1, %s2803_s12  ;;  %s2807_s13 = sphi %s2875_s13, %s19_s13   ;;  %s2803_s12 = sphi %s2873_s12, %s3421_s12   ;;  %s2799_s11 = sphi %s2871_s11, %s3420_s11   ;;  %s2795_s10 = sphi %s2869_s10, %s3419_s10   ;;  %s2791_s30 = sphi %s2867_s30, %s3418_s30  }
   0x4   : > { %p29_p0 = scmp.ge.s32.totalorder %s28_s14, 2  ;;  %p2303_p1 = scmp.ge.s32.totalorder %s2807_s13, 1 }
   0x5   : > { %p386_p2 = scmp.lt.s32.totalorder %s2807_s13, 5 }
   0x6   : > { %s3423_s14 = smov (%p29_p0, %s28_s14), 0  ;;  %s3425_s15 = smov (!%p29_p0, %s31_s15), %s2803_s12 }
   0x7   : > { %3385 = sst [smem:[#allocation3_spill]] %s3423_s14  ;;  %p387_p3 = pnand %p2303_p1, %p386_p2 }
   0x8   : > { %p33_p4 = scmp.ge.s32.totalorder %s3425_s15, 2  ;;  %s2307_s16 = sshll.u32 (!%p387_p3), %s2795_s10, 4  ;;  %vm579_vm0 = vcmask (!%p387_p3), 130048   ;;  %v2967_v9 = vld [vmem:[%s3380_s6] ss:$0 sm:$0xff] (!%p387_p3)  ;;  %vm717_vm1 = vcmask (!%p387_p3), 31744  }
   0x9   : > { %390 = sbr.rel (%p387_p3) target bundleno = 1340 (0x53c), region = 56  ;;  %s2308_s17 = sshll.u32 (!%p387_p3), %s2791_s30, 3 }
   0xa   : > { %s3427_s15 = smov (%p33_p4, %s3425_s15), 0  ;;  %s461_s18 = sadd.s32 (!%p387_p3), %s2308_s17, %s2307_s16 }
   0xb   : > { %3386 = sst [smem:[#allocation4_spill]] %s3427_s15  ;;  %s2393_s19 = sadd.s32 (!%p387_p3), 8, %s2308_s17 }
   0xc   : > { %s3387_s3 = sld [smem:[#allocation5_spill]] (!%p387_p3)  ;;  %s2309_s22 = sadd.s32 (!%p387_p3), 4294967295, %s461_s18 }
   0xd   : > { %s480_s23 = sadd.s32 (!%p387_p3), %s2393_s19, %s2307_s16  ;;  %p463_p5 = scmp.gt.s32.totalorder (!%p387_p3), %s2309_s22, %s2307_s16 }
   0xe   : > { %s481_s24 = sadd.s32 (!%p387_p3), 15, %s2307_s16  ;;  %s2304_s25 = sshll.u32 (!%p387_p3), %s2795_s10, 1 }
   0xf   : > { %p482_p6 = scmp.lt.s32.totalorder (!%p387_p3), %s480_s23, %s481_s24  ;;  %s450_s27 = sadd.s32 (!%p387_p3), %s2791_s30, %s2304_s25 }
  0x10   : > { %s3429_s22 = smov (!%p463_p5, %s2309_s22), %s2307_s16  ;;  %s2305_s29 = sshll.u32 %s450_s27, 4 }
  0x11   : > { %s3431_s23 = smov (!%p482_p6, %s480_s23), %s481_s24  ;;  %s2310_s26 = sshll.u32 %s3429_s22, 1 }
  0x12   : > { %v2906_v0 = vld [vmem:[%s3387_s3] sm:$0xff]   ;;  %p466_p7 = scmp.lt.s32.totalorder %s2310_s26, 63  ;;  %s2314_s28 = sshll.u32 %s3431_s23, 1 }
  0x13   : > { %2443 = vmatprep.subr.bf16.mxu0 %v2906_v0  ;;  %2545 = vmatprep.subr.bf16.mxu1 %v2906_v0  ;;  %p485_p8 = scmp.lt.s32.totalorder %s2314_s28, 63  ;;  %p452_p9 = scmp.lt.s32.totalorder %s2305_s29, 63 }
  0x14   : > { %2444 = vmatpush3.bf16.msra.mxu0 %v2906_v0  ;;  %2546 = vmatpush3.bf16.msra.mxu1 %v2906_v0  ;;  %s3433_s26 = smov (!%p466_p7, %s2310_s26), 63  ;;  %p2337_p10 = scmp.le.s32.totalorder %s2791_s30, 0 }
  0x15   : > { %s3435_s28 = smov (!%p485_p8, %s2314_s28), 63  ;;  %s2311_s17 = sshll.u32 %s3433_s26, 2  ;;  %v2809_v58 = vmov (!%p2337_p10), 0.0   ;;  %vm2810_vm2 = vmmov (!%p2337_p10), 0  }
  0x16   : > { %s2917_s20 = scalar_lea.vmem %s3375_s1, %s2311_s17  ;;  %s2315_s21 = sshll.u32 %s3435_s28, 2  ;;  %2461 = vmatprep.subr.bf16.mxu0 (!%p2337_p10), %v2809_v58 }
  0x17   : > { %s2922_s16 = scalar_lea.vmem %s3376_s2, %s2315_s21  ;;  %s3437_s29 = smov (!%p452_p9, %s2305_s29), 63  ;;  %v2664_v59 = vld [vmem:[%s2917_s20] sm:$0xff] (!%p2337_p10)  }
  0x18   : > { %s2306_s22 = sshll.u32 %s3437_s29, 2  ;;  %s2318_s23 = sshll.u32 %s3437_s29, 3 }
  0x19   : > { %s455_s27 = scalar_lea.vmem %s3374_s0, %s2306_s22  ;;  %s2930_s14 = scalar_lea.vmem %s3383_s9, %s2318_s23 }
  0x1a   : > { %v2932_v1 = vld [vmem:[%s455_s27] sm:$0xff]   ;;  %v2936_v3 = vld [vmem:[%s455_s27 + $0x8] sm:$0xff]   ;;  %v2940_v5 = vld [vmem:[%s455_s27 + $0x10] sm:$0xff]  }
  0x1b   : > { %v2934_v2 = vld [vmem:[%s455_s27 + $0x20] sm:$0xff]   ;;  %v2938_v4 = vld [vmem:[%s455_s27 + $0x28] sm:$0xff]   ;;  %v2942_v6 = vld [vmem:[%s455_s27 + $0x30] sm:$0xff]   ;;  %2445 = vmatprep.mubr.msk.bf16.mxu0 %vm579_vm0, %v2932_v1 }
  0x1c   : > { %2453 = vmatprep.mubr.msk.bf16.mxu1 %vm579_vm0, %v2934_v2  ;;  %2446 = vmatmul.mubr.msk.bf16.vlgmr.msra.gmra.mrb[0].mxu0 %vm579_vm0, %v2936_v3  ;;  %v2956_v7 = vld [vmem:[%s455_s27 + $0x18] sm:$0xff]  }
  0x1d   : > { %2454 = vmatmul.mubr.msk.bf16.vlgmr.msra.gmra.mrb[0].mxu1 %vm579_vm0, %v2938_v4  ;;  %2449 = vmatprep.mubr.msk.bf16.mxu0 %vm579_vm0, %v2940_v5  ;;  %v2958_v8 = vld [vmem:[%s455_s27 + $0x38] sm:$0xff]  }
  0x1e   : > { %2457 = vmatprep.mubr.msk.bf16.mxu1 %vm579_vm0, %v2942_v6  ;;  %2462 = vmatpush3.bf16.msra.mxu0 (!%p2337_p10), %v2906_v0 }
  0x24   : > { %2450 = vmatmul.mubr.msk.bf16.gmra.mrb[4].mxu0 %vm579_vm0, %v2956_v7 }
  0x25   : > { %2458 = vmatmul.mubr.msk.bf16.gmra.mrb[4].mxu1 %vm579_vm0, %v2958_v8  ;;  %2463 = vmatprep.mubr.msk.bf16.mxu0 (!%p2337_p10), %vm2810_vm2, %v2809_v58 }
  0xef   : > { %v2447_v10 = vpop.f32.mrb[0].mxu0 }
  0xf0   : > { %v2455_v11 = vpop.f32.mrb[0].mxu1  ;;  %v647_v12 = vadd.f32 %v2447_v10, %v2967_v9  ;;  %v638_v14 = vpop.f32.mrb[1].mxu0 }
  0xf1   : > { %v679_v13 = vadd.f32 %v2455_v11, %v2967_v9  ;;  %v670_v15 = vpop.f32.mrb[1].mxu1  ;;  %v639_v16 = vadd.f32 %v2967_v9, %v638_v14  ;;  %v2448_v18 = vpop.f32.mrb[2].mxu0 }
  0xf2   : > { %v671_v17 = vadd.f32 %v2967_v9, %v670_v15  ;;  %v2456_v19 = vpop.f32.mrb[2].mxu1  ;;  %v703_v20 = vmax.f32 %v647_v12, 0.0  ;;  %v650_v22 = vadd.f32 %v2448_v18, %v2967_v9  ;;  %v641_v24 = vpop.f32.mrb[3].mxu0  ;;  %2464 = vmatmul.mubr.msk.bf16.vlgmr.msra.gmra.mrb[0].mxu0 (!%p2337_p10), %vm579_vm0, %v2664_v59 }
  0xf3   : > { %v711_v21 = vmax.f32 %v679_v13, 0.0  ;;  %v682_v23 = vadd.f32 %v2456_v19, %v2967_v9  ;;  %v673_v25 = vpop.f32.mrb[3].mxu1  ;;  %v701_v26 = vmax.f32 %v639_v16, 0.0  ;;  %v642_v28 = vadd.f32 %v2967_v9, %v641_v24 }
  0xf4   : > { %v709_v27 = vmax.f32 %v671_v17, 0.0  ;;  %v674_v29 = vadd.f32 %v2967_v9, %v673_v25  ;;  %720 = vst.msk [vmem:[#allocation2 + $0x28] sm:$0xff] %vm717_vm1, %v703_v20  ;;  %v704_v30 = vmax.f32 %v650_v22, 0.0 }
  0xf5   : > { %728 = vst.msk [vmem:[#allocation2 + $0x68] sm:$0xff] %vm717_vm1, %v711_v21  ;;  %v712_v31 = vmax.f32 %v682_v23, 0.0  ;;  %718 = vst.msk [vmem:[#allocation2 + $0x18] sm:$0xff] %vm717_vm1, %v701_v26  ;;  %v702_v32 = vmax.f32 %v642_v28, 0.0 }
  0xf6   : > { %726 = vst.msk [vmem:[#allocation2 + $0x58] sm:$0xff] %vm717_vm1, %v709_v27  ;;  %v710_v33 = vmax.f32 %v674_v29, 0.0  ;;  %721 = vst.msk [vmem:[#allocation2 + $0x30] sm:$0xff] %vm717_vm1, %v704_v30 }
  0xf7   : > { %729 = vst.msk [vmem:[#allocation2 + $0x70] sm:$0xff] %vm717_vm1, %v712_v31  ;;  %719 = vst.msk [vmem:[#allocation2 + $0x20] sm:$0xff] %vm717_vm1, %v702_v32  ;;  %v2451_v34 = vpop.f32.mrb[4].mxu0 }
  0xf8   : > { %727 = vst.msk [vmem:[#allocation2 + $0x60] sm:$0xff] %vm717_vm1, %v710_v33  ;;  %v2459_v35 = vpop.f32.mrb[4].mxu1  ;;  %v663_v36 = vadd.f32 %v2451_v34, %v2967_v9  ;;  %v654_v38 = vpop.f32.mrb[5].mxu0 }
  0xf9   : > { %v695_v37 = vadd.f32 %v2459_v35, %v2967_v9  ;;  %v686_v39 = vpop.f32.mrb[5].mxu1  ;;  %v655_v40 = vadd.f32 %v2967_v9, %v654_v38  ;;  %v2452_v42 = vpop.f32.mrb[6].mxu0 }
  0xfa   : > { %v687_v41 = vadd.f32 %v2967_v9, %v686_v39  ;;  %v2460_v43 = vpop.f32.mrb[6].mxu1  ;;  %v707_v44 = vmax.f32 %v663_v36, 0.0  ;;  %v666_v46 = vadd.f32 %v2452_v42, %v2967_v9  ;;  %v657_v48 = vpop.f32.mrb[7].mxu0  ;;  %737 = sbr.rel (%p2337_p10) target bundleno = 461 (0x1cd), region = 60 }
  0xfb   : > { %v715_v45 = vmax.f32 %v695_v37, 0.0  ;;  %v698_v47 = vadd.f32 %v2460_v43, %v2967_v9  ;;  %v689_v49 = vpop.f32.mrb[7].mxu1  ;;  %v705_v50 = vmax.f32 %v655_v40, 0.0  ;;  %v658_v52 = vadd.f32 %v2967_v9, %v657_v48 }
  0xfc   : > { %v713_v51 = vmax.f32 %v687_v41, 0.0  ;;  %v690_v53 = vadd.f32 %v2967_v9, %v689_v49  ;;  %724 = vst.msk [vmem:[#allocation2 + $0x48] sm:$0xff] %vm717_vm1, %v707_v44  ;;  %v708_v54 = vmax.f32 %v666_v46, 0.0 }
  0xfd   : > { %732 = vst.msk [vmem:[#allocation2 + $0x88] sm:$0xff] %vm717_vm1, %v715_v45  ;;  %v716_v55 = vmax.f32 %v698_v47, 0.0  ;;  %722 = vst.msk [vmem:[#allocation2 + $0x38] sm:$0xff] %vm717_vm1, %v705_v50  ;;  %v706_v56 = vmax.f32 %v658_v52, 0.0 }
  0xfe   : > { %730 = vst.msk [vmem:[#allocation2 + $0x78] sm:$0xff] %vm717_vm1, %v713_v51  ;;  %v714_v57 = vmax.f32 %v690_v53, 0.0  ;;  %725 = vst.msk [vmem:[#allocation2 + $0x50] sm:$0xff] %vm717_vm1, %v708_v54 }
  0xff   : > { %733 = vst.msk [vmem:[#allocation2 + $0x90] sm:$0xff] %vm717_vm1, %v716_v55  ;;  %723 = vst.msk [vmem:[#allocation2 + $0x40] sm:$0xff] %vm717_vm1, %v706_v56 }
 0x100   : > { %731 = vst.msk [vmem:[#allocation2 + $0x80] sm:$0xff] %vm717_vm1, %v714_v57 }
 0x1c5   : > { %v782_v60 = vpop.f32.mrb[0].mxu0 }
 0x1c6   : > { %v783_v61 = vadd.f32 %v2967_v9, %v782_v60  ;;  %v2465_v62 = vpop.f32.mrb[1].mxu0 }
 0x1c7   : > { %v785_v63 = vpop.f32.mrb[2].mxu0 }
 0x1c8   : > { %v789_v10 = vmax.f32 %v783_v61, 0.0  ;;  %v786_v11 = vadd.f32 %v2967_v9, %v785_v63  ;;  %v2466_v12 = vpop.f32.mrb[3].mxu0 }
 0x1ca   : > { %791 = vst.msk [vmem:[#allocation2 + $0x8] sm:$0xff] %vm717_vm1, %v789_v10  ;;  %v790_v13 = vmax.f32 %v786_v11, 0.0 }
 0x1cc   : > { %792 = vst.msk [vmem:[#allocation2 + $0x10] sm:$0xff] %vm717_vm1, %v790_v13 }
 0x1cd PF: > { %p2340_p11 = scmp.ne.s32.totalorder %s2791_s30, 0 }
 0x1ce   : > { %v2811_v14 = vmov (!%p2340_p11), 0.0  }
 0x1cf   : > { %796 = sbr.rel (%p2340_p11) target bundleno = 470 (0x1d6), region = 64  ;;  %797 = vst.msk [vmem:[#allocation2 + $0x8] sm:$0xff] (!%p2340_p11), %vm717_vm1, %v2811_v14  ;;  %798 = vst.msk [vmem:[#allocation2 + $0x10] sm:$0xff] (!%p2340_p11), %vm717_vm1, %v2811_v14 }
 0x1d6 PF: > { %p2341_p12 = scmp.ge.s32.totalorder %s2791_s30, 1 }
 0x1d7   : > { %v2812_v15 = vmov (!%p2341_p12), 0.0   ;;  %vm2813_vm3 = vmmov (!%p2341_p12), 0   ;;  %v2665_v16 = vld [vmem:[%s2922_s16] sm:$0xff] (!%p2341_p12)  }
 0x1d8   : > { %802 = sbr.rel (%p2341_p12) target bundleno = 695 (0x2b7), region = 68  ;;  %2467 = vmatprep.subr.bf16.mxu0 (!%p2341_p12), %v2812_v15  ;;  %2469 = vmatprep.mubr.msk.bf16.mxu0 (!%p2341_p12), %vm2813_vm3, %v2812_v15 }
 0x1d9   : > { %2468 = vmatpush3.bf16.msra.mxu0 (!%p2341_p12), %v2906_v0 }
 0x1dc   : > { %2470 = vmatmul.mubr.msk.bf16.vlgmr.msra.gmra.mrb[0].mxu0 (!%p2341_p12), %vm579_vm0, %v2665_v16 }
 0x2af   : > { %v847_v17 = vpop.f32.mrb[0].mxu0 }
 0x2b0   : > { %v848_v18 = vadd.f32 %v2967_v9, %v847_v17  ;;  %v2471_v19 = vpop.f32.mrb[1].mxu0 }
 0x2b1   : > { %v850_v20 = vpop.f32.mrb[2].mxu0 }
 0x2b2   : > { %v854_v21 = vmax.f32 %v848_v18, 0.0  ;;  %v851_v22 = vadd.f32 %v2967_v9, %v850_v20  ;;  %v2472_v23 = vpop.f32.mrb[3].mxu0 }
 0x2b4   : > { %856 = vst.msk [vmem:[#allocation2 + $0x98] sm:$0xff] %vm717_vm1, %v854_v21  ;;  %v855_v24 = vmax.f32 %v851_v22, 0.0 }
 0x2b6   : > { %857 = vst.msk [vmem:[#allocation2 + $0xa0] sm:$0xff] %vm717_vm1, %v855_v24 }
 0x2b7 PF: > { %p2344_p13 = scmp.ne.s32.totalorder %s2791_s30, 1 }
 0x2b8   : > { %v2814_v0 = vmov (!%p2344_p13), 0.0  }
 0x2b9   : > { %861 = sbr.rel (%p2344_p13) target bundleno = 704 (0x2c0), region = 72  ;;  %862 = vst.msk [vmem:[#allocation2 + $0x98] sm:$0xff] (!%p2344_p13), %vm717_vm1, %v2814_v0  ;;  %863 = vst.msk [vmem:[#allocation2 + $0xa0] sm:$0xff] (!%p2344_p13), %vm717_vm1, %v2814_v0 }
 0x2c0 PF: > { %v866_v25 = vld [vmem:[#allocation2 + $0x18] sm:$0xff]  ;;  %v867_v26 = vld [vmem:[#allocation2 + $0x20] sm:$0xff]  ;;  %v924_v27 = vlaneseq  ;;  %v868_v28 = vld [vmem:[#allocation2 + $0x28] sm:$0xff]  ;;  %s2815_s28 = smov 4   ;;  %s2816_s30 = smov 8   ;;  %vm1547_vm9 = vcmask 1045504  }
 0x2c1   : > { %v2666_v9 = vpack.i.bf16 %v867_v26, %v866_v25  ;;  %v869_v29 = vld [vmem:[#allocation2 + $0x30] sm:$0xff]  ;;  %v870_v34 = vld [vmem:[#allocation2 + $0x38] sm:$0xff]  ;;  %v871_v35 = vld [vmem:[#allocation2 + $0x40] sm:$0xff]  ;;  %vm2022_vm15 = vcmask 1041408  }
 0x2c2   : > { %v3023_v30 = vshrl.u32 %v924_v27, 7  ;;  %v2671_v31 = vpack.i.bf16 %v869_v29, %v868_v28  ;;  %v907_v38 = vld [vmem:[#allocation2 + $0x21] sm:$0xff]  ;;  %v909_v40 = vld [vmem:[#allocation2 + $0x31] sm:$0xff]  ;;  %v906_v43 = vld [vmem:[#allocation2 + $0x19] sm:$0xff]  ;;  %v2676_v44 = vpack.i.bf16 %v871_v35, %v870_v34 }
 0x2c3   : > { %2667 = vrot.lane.b32.xlu0 %v2666_v9, %s2815_s28  ;;  %v911_v45 = vld [vmem:[#allocation2 + $0x41] sm:$0xff]  ;;  %v910_v47 = vld [vmem:[#allocation2 + $0x39] sm:$0xff]  ;;  %v908_v49 = vld [vmem:[#allocation2 + $0x29] sm:$0xff] }
 0x2c4   : > { %v928_v32 = vadd.s32 24, %v3023_v30  ;;  %v930_v33 = vadd.s32 40, %v3023_v30  ;;  %v932_v36 = vadd.s32 56, %v3023_v30  ;;  %v936_v37 = vadd.s32 88, %v3023_v30  ;;  %v874_v57 = vld [vmem:[#allocation2 + $0x58] sm:$0xff]  ;;  %v875_v58 = vld [vmem:[#allocation2 + $0x60] sm:$0xff] }
 0x2c5   : > { %v934_v42 = vadd.s32 72, %v3023_v30  ;;  %v872_v59 = vld [vmem:[#allocation2 + $0x48] sm:$0xff]  ;;  %v873_v60 = vld [vmem:[#allocation2 + $0x50] sm:$0xff]  ;;  %v938_v11 = vadd.s32 104, %v3023_v30  ;;  %v2706_v12 = vpack.i.bf16 %v875_v58, %v874_v57  ;;  %v914_v14 = vld [vmem:[#allocation2 + $0x59] sm:$0xff]  ;;  %v940_v19 = vadd.s32 120, %v3023_v30 }
 0x2c6   : > { %v970_v39 = vand.u32 15, %v928_v32  ;;  %v984_v41 = vand.u32 15, %v930_v33  ;;  %v998_v46 = vand.u32 15, %v932_v36  ;;  %v1026_v51 = vand.u32 15, %v936_v37  ;;  %v915_v61 = vld [vmem:[#allocation2 + $0x61] sm:$0xff]  ;;  %v913_v63 = vld [vmem:[#allocation2 + $0x51] sm:$0xff] }
 0x2c7   : > { %2672 = vrot.lane.b32.xlu0 %v2671_v31, %s2815_s28  ;;  %v1012_v54 = vand.u32 15, %v934_v42  ;;  %v2691_v13 = vpack.i.bf16 %v873_v60, %v872_v59  ;;  %v912_v16 = vld [vmem:[#allocation2 + $0x49] sm:$0xff]  ;;  %v1040_v18 = vand.u32 15, %v938_v11  ;;  %v878_v23 = vld [vmem:[#allocation2 + $0x78] sm:$0xff]  ;;  %v879_v24 = vld [vmem:[#allocation2 + $0x80] sm:$0xff]  ;;  %v1054_v29 = vand.u32 15, %v940_v19 }
 0x2c8   : > { %vm1268_vm4 = vcmp.lt.s32.totalorder %v970_v39, 15  ;;  %vm1270_vm5 = vcmp.lt.s32.totalorder %v984_v41, 15  ;;  %vm1272_vm6 = vcmp.lt.s32.totalorder %v998_v46, 15  ;;  %vm3034_vm7 = vcmp.lt.s32.totalorder %v1026_v51, 15  ;;  %v2766_v20 = vld [vmem:[%s3378_s4 + $0x8] sm:$0x3f]  }
 0x2c9   : > { %v1328_v48 = vsel %vm1268_vm4, %v907_v38, 0.0  ;;  %v1330_v50 = vsel %vm1270_vm5, %v909_v40, 0.0  ;;  %v1332_v53 = vsel %vm1272_vm6, %v911_v45, 0.0  ;;  %vm3038_vm8 = vcmp.lt.s32.totalorder %v1012_v54, 15  ;;  %2596 = vmatprep.subr.msk.bf16.mxu0 %vm1547_vm9, %v2766_v20  ;;  %v876_v0 = vld [vmem:[#allocation2 + $0x68] sm:$0xff]  ;;  %v877_v25 = vld [vmem:[#allocation2 + $0x70] sm:$0xff] }
 0x2ca   : > { %v2681_v52 = vpack.i.bf16 %v1328_v48, %v906_v43  ;;  %v2696_v55 = vpack.i.bf16 %v1332_v53, %v910_v47  ;;  %v2686_v56 = vpack.i.bf16 %v1330_v50, %v908_v49  ;;  %v1336_v15 = vsel %vm3034_vm7, %v915_v61, 0.0  ;;  %v2767_v27 = vld [vmem:[%s3378_s4 + $0x10] sm:$0x3f]   ;;  %v880_v35 = vld [vmem:[#allocation2 + $0x88] sm:$0xff]  ;;  %v918_v47 = vld [vmem:[#allocation2 + $0x79] sm:$0xff] }
 0x2cb   : > { %2677 = vrot.lane.b32.xlu0 %v2676_v44, %s2815_s28  ;;  %v1334_v17 = vsel %vm3038_vm8, %v913_v63, 0.0  ;;  %v2716_v21 = vpack.i.bf16 %v1336_v15, %v914_v14  ;;  %v1703_v26 = vsel %vm1547_vm9, %v2766_v20, 0  ;;  %v917_v9 = vld [vmem:[#allocation2 + $0x71] sm:$0xff]  ;;  %vm3060_vm10 = vcmp.lt.s32.totalorder %v1040_v18, 15  ;;  %v916_v37 = vld [vmem:[#allocation2 + $0x69] sm:$0xff]  ;;  %v919_v39 = vld [vmem:[#allocation2 + $0x81] sm:$0xff] }
 0x2cc   : > { %2682 = vrot.lane.b32.xlu1 %v2681_v52, %s2816_s30  ;;  %v2701_v22 = vpack.i.bf16 %v1334_v17, %v912_v16  ;;  %v942_v31 = vadd.s32 136, %v3023_v30  ;;  %2492 = vmatpush3.bf16.msra.mxu0 %v1703_v26  ;;  %v2726_v32 = vpack.i.bf16 %v879_v24, %v878_v23  ;;  %v3068_v33 = vsel %vm1547_vm9, %v2767_v27, 0  ;;  %v881_v36 = vld [vmem:[#allocation2 + $0x90] sm:$0xff]  ;;  %v864_v45 = vld [vmem:[#allocation2 + $0x8] sm:$0xff]  ;;  %v2768_v54 = vld [vmem:[%s3378_s4] sm:$0x3f]  }
 0x2cd   : > { %2597 = vmatprep.subr.msk.bf16.mxu0 %vm1547_vm9, %v2767_v27  ;;  %v2711_v34 = vpack.i.bf16 %v877_v25, %v876_v0  ;;  %v1338_v38 = vsel %vm3060_vm10, %v917_v9, 0.0  ;;  %vm3073_vm11 = vcmp.lt.s32.totalorder %v1054_v29, 15  ;;  %v926_v42 = vadd.s32 8, %v3023_v30  ;;  %v865_v46 = vld [vmem:[#allocation2 + $0x10] sm:$0xff]  ;;  %v883_v57 = vld [vmem:[#allocation2 + $0xa0] sm:$0xff]  ;;  %2595 = vmatprep.subr.msk.bf16.mxu1 %vm1547_vm9, %v2768_v54 }
 0x2ce   : > { %v1068_v41 = vand.u32 15, %v942_v31  ;;  %v2736_v43 = vpack.i.bf16 %v881_v36, %v880_v35  ;;  %v2721_v44 = vpack.i.bf16 %v1338_v38, %v916_v37  ;;  %v1340_v48 = vsel %vm3073_vm11, %v919_v39, 0.0  ;;  %v921_v49 = vld [vmem:[#allocation2 + $0x91] sm:$0xff]  ;;  %v920_v58 = vld [vmem:[#allocation2 + $0x89] sm:$0xff]  ;;  %v922_v15 = vld [vmem:[#allocation2 + $0x99] sm:$0xff] }
 0x2cf   : > { %2697 = vrot.lane.b32.xlu0 %v2696_v55, %s2816_s30  ;;  %v956_v51 = vand.u32 15, %v926_v42  ;;  %v944_v52 = vadd.s32 152, %v3023_v30  ;;  %v2746_v53 = vpack.i.bf16 %v865_v46, %v864_v45  ;;  %v2731_v55 = vpack.i.bf16 %v1340_v48, %v918_v47  ;;  %v905_v61 = vld [vmem:[#allocation2 + $0x11] sm:$0xff]  ;;  %v904_v11 = vld [vmem:[#allocation2 + $0x9] sm:$0xff]  ;;  %v1990_v18 = vld [vmem:[%s3379_s5] sm:$0x3] }
 0x2d0   : > { %2687 = vrot.lane.b32.xlu1 %v2686_v56, %s2816_s30  ;;  %vm3082_vm12 = vcmp.lt.s32.totalorder %v1068_v41, 15  ;;  %v882_v56 = vld [vmem:[#allocation2 + $0x98] sm:$0xff]  ;;  %v1549_v60 = vsel %vm1547_vm9, %v2768_v54, 0  ;;  %v3105_v19 = vsel %vm2022_vm15, %v1990_v18, 0  ;;  %v927_v20 = vadd.s32 16, %v3023_v30  ;;  %v888_v37 = vld [vmem:[#allocation2 + $0x27] sm:$0xff] }
 0x2d1   : > { %v1342_v59 = vsel %vm3082_vm12, %v921_v49, 0.0  ;;  %vm1266_vm13 = vcmp.lt.s32.totalorder %v956_v51, 15  ;;  %v1082_v62 = vand.u32 15, %v944_v52  ;;  %2474 = vmatpush3.bf16.msra.mxu1 %v1549_v60  ;;  %v2756_v63 = vpack.i.bf16 %v883_v57, %v882_v56  ;;  %v886_v25 = vld [vmem:[#allocation2 + $0x17] sm:$0xff]  ;;  %v887_v29 = vld [vmem:[#allocation2 + $0x1f] sm:$0xff]  ;;  %v889_v42 = vld [vmem:[#allocation2 + $0x2f] sm:$0xff] }
 0x2d2   : > { %v2741_v10 = vpack.i.bf16 %v1342_v59, %v920_v58  ;;  %2598 = vmatprep.subr.msk.bf16.mxu1 %vm2022_vm15, %v1990_v18  ;;  %v929_v23 = vadd.s32 32, %v3023_v30  ;;  %v935_v36 = vadd.s32 80, %v3023_v30  ;;  %v933_v40 = vadd.s32 64, %v3023_v30  ;;  %v891_v48 = vld [vmem:[#allocation2 + $0x3f] sm:$0xff]  ;;  %v892_v26 = vld [vmem:[#allocation2 + $0x47] sm:$0xff] }
 0x2d3   : > { %2707 = vrot.lane.b32.xlu0 %v2706_v12, %s2815_s28  ;;  %v1326_v12 = vsel %vm1266_vm13, %v905_v61, 0.0  ;;  %vm1284_vm14 = vcmp.lt.s32.totalorder %v1082_v62, 15  ;;  %vm1490_vm5 = vcmask 64512   ;;  %vm1522_vm6 = vcmask 97280  }
 0x2d4   : > { %2692 = vrot.lane.b32.xlu1 %v2691_v13, %s2815_s28  ;;  %v923_v13 = vld [vmem:[#allocation2 + $0xa1] sm:$0xff]  ;;  %v2751_v14 = vpack.i.bf16 %v1326_v12, %v904_v11  ;;  %v977_v27 = vand.u32 15, %v929_v23  ;;  %v1019_v54 = vand.u32 15, %v935_v36  ;;  %v1005_v56 = vand.u32 15, %v933_v40  ;;  %v893_v36 = vld [vmem:[#allocation2 + $0x4f] sm:$0xff] }
 0x2d5   : > { %v1344_v16 = vsel %vm1284_vm14, %v923_v13, 0.0 }
 0x2d6   : > { %v2761_v17 = vpack.i.bf16 %v1344_v16, %v922_v15  ;;  %vm3121_vm4 = vcmp.gt.s32.totalorder %v977_v27, 0  ;;  %v894_v15 = vld [vmem:[#allocation2 + $0x57] sm:$0xff]  ;;  %vm3140_vm7 = vcmp.gt.s32.totalorder %v1019_v54, 0  ;;  %vm3151_vm8 = vcmp.gt.s32.totalorder %v1005_v56, 0 }
 0x2d7   : > { %2717 = vrot.lane.b32.xlu0 %v2716_v21, %s2816_s30  ;;  %v931_v21 = vadd.s32 48, %v3023_v30 }
 0x2d8   : > { %2702 = vrot.lane.b32.xlu1 %v2701_v22, %s2816_s30  ;;  %v963_v22 = vand.u32 15, %v927_v20  ;;  %v937_v20 = vadd.s32 96, %v3023_v30 }
 0x2d9   : > { %v991_v0 = vand.u32 15, %v931_v21 }
 0x2da   : > { %vm3110_vm2 = vcmp.gt.s32.totalorder %v963_v22, 0 }
 0x2db   : > { %2727 = vrot.lane.b32.xlu0 %v2726_v32, %s2815_s28  ;;  %v890_v32 = vld [vmem:[#allocation2 + $0x37] sm:$0xff]  ;;  %vm3114_vm3 = vcmp.gt.s32.totalorder %v991_v0, 0  ;;  %v1247_v35 = vsel %vm3110_vm2, %v886_v25, 0.0 }
 0x2dc   : > { %2712 = vrot.lane.b32.xlu1 %v2711_v34, %s2815_s28 }
 0x2df   : > { %2737 = vrot.lane.b32.xlu0 %v2736_v43, %s2815_s28  ;;  %v1251_v43 = vsel %vm3114_vm3, %v890_v32, 0.0  ;;  %v939_v32 = vadd.s32 112, %v3023_v30 }
 0x2e0   : > { %2722 = vrot.lane.b32.xlu1 %v2721_v44, %s2816_s30 }
 0x2e3   : > { %2747 = vrot.lane.b32.xlu0 %v2746_v53, %s2815_s28  ;;  %v1249_v53 = vsel %vm3121_vm4, %v888_v37, 0.0  ;;  %v1253_v37 = vsel %vm3151_vm8, %v892_v26, 0.0  ;;  %v900_v26 = vld [vmem:[#allocation2 + $0x87] sm:$0xff] }
 0x2e4   : > { %2732 = vrot.lane.b32.xlu1 %v2731_v55, %s2816_s30 }
 0x2e7   : > { %2757 = vrot.lane.b32.xlu0 %v2756_v63, %s2815_s28 }
 0x2e8   : > { %2742 = vrot.lane.b32.xlu1 %v2741_v10, %s2816_s30 }
 0x2ec   : > { %2752 = vrot.lane.b32.xlu1 %v2751_v14, %s2816_s30 }
 0x2f0   : > { %2762 = vrot.lane.b32.xlu1 %v2761_v17, %s2816_s30 }
 0x335   : > { %v2668_v24 = vpop.permute.xlu0 %2667 }
 0x336   : > { %v2670_v9 = vunpack.i.h.bf16 %v2668_v24  ;;  %v2669_v31 = vunpack.i.l.bf16 %v2668_v24 }
 0x338   : > { %v1477_v41 = vsel %vm717_vm1, %v887_v29, %v2670_v9  ;;  %v1476_v45 = vsel %vm717_vm1, %v1247_v35, %v2669_v31  ;;  %v895_v9 = vld [vmem:[#allocation2 + $0x5f] sm:$0xff] }
 0x339   : > { %v2673_v28 = vpop.permute.xlu0 %2672 }
 0x33a   : > { %v2675_v39 = vunpack.i.h.bf16 %v2673_v28  ;;  %v2674_v47 = vunpack.i.l.bf16 %v2673_v28  ;;  %v1255_v28 = vsel %vm3140_vm7, %v894_v15, 0.0 }
 0x33c   : > { %v1479_v55 = vsel %vm717_vm1, %v889_v42, %v2675_v39  ;;  %v1478_v62 = vsel %vm717_vm1, %v1249_v53, %v2674_v47  ;;  %v1033_v42 = vand.u32 15, %v937_v20  ;;  %v1047_v47 = vand.u32 15, %v939_v32 }
 0x33d   : > { %v2678_v44 = vpop.permute.xlu0 %2677 }
 0x33e   : > { %v2683_v46 = vpop.permute.xlu1 %2682  ;;  %v2680_v49 = vunpack.i.h.bf16 %v2678_v44  ;;  %v2679_v50 = vunpack.i.l.bf16 %v2678_v44  ;;  %vm3182_vm9 = vcmp.gt.s32.totalorder %v1033_v42, 0  ;;  %vm3188_vm10 = vcmp.gt.s32.totalorder %v1047_v47, 0 }
 0x33f   : > { %v2685_v51 = vunpack.i.h.bf16 %v2683_v46  ;;  %v2684_v52 = vunpack.i.l.bf16 %v2683_v46 }
 0x340   : > { %v1481_v57 = vsel %vm717_vm1, %v891_v48, %v2680_v49  ;;  %v1480_v58 = vsel %vm717_vm1, %v1251_v43, %v2679_v50  ;;  %v941_v48 = vadd.s32 128, %v3023_v30 }
 0x341   : > { %v1493_v59 = vsel %vm1490_vm5, %v1476_v45, %v2684_v52  ;;  %v1494_v60 = vsel %vm1490_vm5, %v1477_v41, %v2685_v51  ;;  %v2698_v61 = vpop.permute.xlu0 %2697 }
 0x342   : > { %v2688_v63 = vpop.permute.xlu1 %2687  ;;  %v3138_v10 = vpack.c.bf16 %v1494_v60, %v1493_v59  ;;  %v2700_v11 = vunpack.i.h.bf16 %v2698_v61  ;;  %v2699_v12 = vunpack.i.l.bf16 %v2698_v61 }
 0x343   : > { %v2690_v13 = vunpack.i.h.bf16 %v2688_v63  ;;  %v2689_v14 = vunpack.i.l.bf16 %v2688_v63 }
 0x344   : > { %2493 = vmatprep.mubr.msk.bf16.mxu0 %vm1522_vm6, %v3138_v10  ;;  %v1497_v17 = vsel %vm1490_vm5, %v1480_v58, %v2699_v12  ;;  %v1498_v18 = vsel %vm1490_vm5, %v1481_v57, %v2700_v11  ;;  %v896_v57 = vld [vmem:[#allocation2 + $0x67] sm:$0xff]  ;;  %v1061_v11 = vand.u32 15, %v941_v48  ;;  %v897_v12 = vld [vmem:[#allocation2 + $0x6f] sm:$0xff] }
 0x345   : > { %v1495_v21 = vsel %vm1490_vm5, %v1478_v62, %v2689_v14  ;;  %v1496_v22 = vsel %vm1490_vm5, %v1479_v55, %v2690_v13  ;;  %v3155_v24 = vpack.c.bf16 %v1498_v18, %v1497_v17  ;;  %v2708_v0 = vpop.permute.xlu0 %2707  ;;  %v898_v62 = vld [vmem:[#allocation2 + $0x77] sm:$0xff]  ;;  %v1257_v13 = vsel %vm3182_vm9, %v896_v57, 0.0 }
 0x346   : > { %v3157_v25 = vpack.c.bf16 %v1496_v22, %v1495_v21  ;;  %v2693_v27 = vpop.permute.xlu1 %2692  ;;  %v2710_v29 = vunpack.i.h.bf16 %v2708_v0  ;;  %v2709_v31 = vunpack.i.l.bf16 %v2708_v0  ;;  %v899_v21 = vld [vmem:[#allocation2 + $0x7f] sm:$0xff]  ;;  %v1259_v22 = vsel %vm3188_vm10, %v898_v62, 0.0 }
 0x347   : > { %v2695_v34 = vunpack.i.h.bf16 %v2693_v27  ;;  %v2694_v35 = vunpack.i.l.bf16 %v2693_v27  ;;  %vm3200_vm11 = vcmp.gt.s32.totalorder %v1061_v11, 0 }
 0x348   : > { %2494 = vmatmul.mubr.msk.bf16.vlgmr.msra.gmra.mrb[0].mxu0 %vm1522_vm6, %v3157_v25  ;;  %v1485_v38 = vsel %vm717_vm1, %v895_v9, %v2710_v29  ;;  %v1484_v39 = vsel %vm717_vm1, %v1255_v28, %v2709_v31  ;;  %v949_v9 = vand.u32 15, %v3023_v30 }
 0x349   : > { %2510 = vmatpush3.bf16.msra.mxu0 %v3068_v33  ;;  %2497 = vmatprep.mubr.msk.bf16.mxu0 %vm1522_vm6, %v3155_v24  ;;  %v2718_v40 = vpop.permute.xlu0 %2717  ;;  %v1483_v49 = vsel %vm717_vm1, %v893_v36, %v2695_v34  ;;  %v1482_v33 = vsel %vm717_vm1, %v1253_v37, %v2694_v35  ;;  %v901_v37 = vld [vmem:[#allocation2 + $0x8f] sm:$0xff] }
 0x34a   : > { %v2703_v41 = vpop.permute.xlu1 %2702  ;;  %v2720_v43 = vunpack.i.h.bf16 %v2718_v40  ;;  %v2719_v44 = vunpack.i.l.bf16 %v2718_v40  ;;  %vm3212_vm12 = vcmp.gt.s32.totalorder %v949_v9, 0 }
 0x34b   : > { %v2705_v45 = vunpack.i.h.bf16 %v2703_v41  ;;  %v2704_v46 = vunpack.i.l.bf16 %v2703_v41  ;;  %v1261_v41 = vsel %vm3200_vm11, %v900_v26, 0.0 }
 0x34c   : > { %v1501_v50 = vsel %vm1490_vm5, %v1484_v39, %v2719_v44  ;;  %v1502_v51 = vsel %vm1490_vm5, %v1485_v38, %v2720_v43  ;;  %v884_v43 = vld [vmem:[#allocation2 + $0x7] sm:$0xff] }
 0x34d   : > { %v1499_v52 = vsel %vm1490_vm5, %v1482_v33, %v2704_v46  ;;  %v1500_v53 = vsel %vm1490_vm5, %v1483_v49, %v2705_v45  ;;  %v3178_v54 = vpack.c.bf16 %v1502_v51, %v1501_v50  ;;  %v2728_v55 = vpop.permute.xlu0 %2727  ;;  %v1245_v57 = vsel %vm3212_vm12, %v884_v43, 0.0 }
 0x34e   : > { %v3180_v56 = vpack.c.bf16 %v1500_v53, %v1499_v52  ;;  %v2713_v59 = vpop.permute.xlu1 %2712  ;;  %v2730_v16 = vunpack.i.h.bf16 %v2728_v55  ;;  %v2729_v17 = vunpack.i.l.bf16 %v2728_v55  ;;  %v885_v55 = vld [vmem:[#allocation2 + $0xf] sm:$0xff] }
 0x34f   : > { %v2715_v60 = vunpack.i.h.bf16 %v2713_v59  ;;  %v2714_v61 = vunpack.i.l.bf16 %v2713_v59 }
 0x350   : > { %2498 = vmatmul.mubr.msk.bf16.gmra.mrb[4].mxu0 %vm1522_vm6, %v3180_v56  ;;  %v1489_v34 = vsel %vm717_vm1, %v899_v21, %v2730_v16  ;;  %v1488_v35 = vsel %vm717_vm1, %v1259_v22, %v2729_v17  ;;  %v943_v16 = vadd.s32 144, %v3023_v30 }
 0x351   : > { %2501 = vmatprep.mubr.msk.bf16.mxu0 %vm1522_vm6, %v3178_v54  ;;  %v2738_v14 = vpop.permute.xlu0 %2737  ;;  %v1487_v23 = vsel %vm717_vm1, %v897_v12, %v2715_v60  ;;  %v1486_v0 = vsel %vm717_vm1, %v1257_v13, %v2714_v61 }
 0x352   : > { %v2723_v15 = vpop.permute.xlu1 %2722  ;;  %v2740_v31 = vunpack.i.h.bf16 %v2738_v14  ;;  %v2739_v38 = vunpack.i.l.bf16 %v2738_v14  ;;  %v1075_v17 = vand.u32 15, %v943_v16 }
 0x353   : > { %v2725_v18 = vunpack.i.h.bf16 %v2723_v15  ;;  %v2724_v20 = vunpack.i.l.bf16 %v2723_v15 }
 0x354   : > { %v1687_v47 = vsel %vm717_vm1, %v901_v37, %v2740_v31  ;;  %v1686_v49 = vsel %vm717_vm1, %v1261_v41, %v2739_v38  ;;  %vm1203_vm13 = vcmp.gt.s32.totalorder %v1075_v17, 0 }
 0x355   : > { %v1503_v28 = vsel %vm1490_vm5, %v1486_v0, %v2724_v20  ;;  %v1504_v29 = vsel %vm1490_vm5, %v1487_v23, %v2725_v18  ;;  %v2748_v42 = vpop.permute.xlu0 %2747  ;;  %v903_v20 = vld [vmem:[#allocation2 + $0x9f] sm:$0xff] }
 0x356   : > { %v1513_v32 = vpack.c.bf16 %v1504_v29, %v1503_v28  ;;  %v2733_v36 = vpop.permute.xlu1 %2732  ;;  %v2750_v50 = vunpack.i.h.bf16 %v2748_v42  ;;  %v2749_v51 = vunpack.i.l.bf16 %v2748_v42 }
 0x357   : > { %v2735_v39 = vunpack.i.h.bf16 %v2733_v36  ;;  %v2734_v40 = vunpack.i.l.bf16 %v2733_v36 }
 0x358   : > { %2502 = vmatmul.mubr.msk.bf16.gmra.mrb[8].mxu0 %vm1522_vm6, %v1513_v32  ;;  %v1475_v61 = vsel %vm717_vm1, %v885_v55, %v2750_v50  ;;  %v1474_v62 = vsel %vm717_vm1, %v1245_v57, %v2749_v51 }
 0x359   : > { %v1505_v45 = vsel %vm1490_vm5, %v1488_v35, %v2734_v40  ;;  %v1506_v46 = vsel %vm1490_vm5, %v1489_v34, %v2735_v39 }
 0x35a   : > { %v1514_v48 = vpack.c.bf16 %v1506_v46, %v1505_v45  ;;  %v2743_v33 = vpop.permute.xlu1 %2742 }
 0x35b   : > { %v2745_v52 = vunpack.i.h.bf16 %v2743_v33  ;;  %v2744_v53 = vunpack.i.l.bf16 %v2743_v33 }
 0x35c   : > { %2505 = vmatprep.mubr.msk.bf16.mxu0 %vm1522_vm6, %v1514_v48 }
 0x35d   : > { %v1688_v58 = vsel %vm1490_vm5, %v1686_v49, %v2744_v53  ;;  %v1689_v59 = vsel %vm1490_vm5, %v1687_v47, %v2745_v52 }
 0x35e   : > { %v1690_v60 = vpack.c.bf16 %v1689_v59, %v1688_v58  ;;  %v2753_v63 = vpop.permute.xlu1 %2752 }
 0x35f   : > { %v2755_v11 = vunpack.i.h.bf16 %v2753_v63  ;;  %v2754_v12 = vunpack.i.l.bf16 %v2753_v63 }
 0x360   : > { %2506 = vmatmul.mubr.msk.bf16.gmra.mrb[12].mxu0 %vm1522_vm6, %v1690_v60 }
 0x361   : > { %2511 = vmatprep.mubr.msk.bf16.mxu0 %vm1522_vm6, %v3157_v25  ;;  %v1491_v13 = vsel %vm1490_vm5, %v1474_v62, %v2754_v12  ;;  %v1492_v14 = vsel %vm1490_vm5, %v1475_v61, %v2755_v11 }
 0x362   : > { %v1507_v15 = vpack.c.bf16 %v1492_v14, %v1491_v13  ;;  %v2763_v18 = vpop.permute.xlu1 %2762 }
 0x363   : > { %v2764_v22 = vunpack.i.l.bf16 %v2763_v18 }
 0x364   : > { %2475 = vmatprep.mubr.msk.bf16.mxu1 %vm1522_vm6, %v1507_v15 }
 0x365   : > { %2476 = vmatmul.mubr.msk.bf16.vlgmr.msra.gmra.mrb[0].mxu1 %vm1522_vm6, %v3138_v10  ;;  %v2758_v10 = vpop.permute.xlu0 %2757 }
 0x366   : > { %2479 = vmatprep.mubr.msk.bf16.mxu1 %vm1522_vm6, %v3157_v25  ;;  %2528 = vmatpush3.bf16.msra.mxu1 %v3105_v19  ;;  %v902_v19 = vld [vmem:[#allocation2 + $0x97] sm:$0xff]  ;;  %v2760_v25 = vunpack.i.h.bf16 %v2758_v10  ;;  %v2759_v30 = vunpack.i.l.bf16 %v2758_v10 }
 0x367   : > { %v1263_v21 = vsel %vm1203_vm13, %v902_v19, 0.0 }
 0x368   : > { %2512 = vmatmul.mubr.msk.bf16.vlgmr.msra.gmra.mrb[0].mxu0 %vm1522_vm6, %v3155_v24  ;;  %v1834_v23 = vsel %vm717_vm1, %v1263_v21, %v2759_v30 }
 0x369   : > { %2515 = vmatprep.mubr.msk.bf16.mxu0 %vm1522_vm6, %v3180_v56  ;;  %v1836_v0 = vsel %vm1490_vm5, %v1834_v23, %v2764_v22 }
 0x36d   : > { %2480 = vmatmul.mubr.msk.bf16.gmra.mrb[4].mxu1 %vm1522_vm6, %v3155_v24  ;;  %v2765_v24 = vunpack.i.h.bf16 %v2763_v18 }
 0x36e   : > { %2483 = vmatprep.mubr.msk.bf16.mxu1 %vm1522_vm6, %v3180_v56  ;;  %v1835_v56 = vsel %vm717_vm1, %v903_v20, %v2760_v25 }
 0x36f   : > { %v1837_v26 = vsel %vm1490_vm5, %v1835_v56, %v2765_v24 }
 0x370   : > { %2516 = vmatmul.mubr.msk.bf16.gmra.mrb[4].mxu0 %vm1522_vm6, %v3178_v54  ;;  %v1838_v27 = vpack.c.bf16 %v1837_v26, %v1836_v0 }
 0x371   : > { %2519 = vmatprep.mubr.msk.bf16.mxu0 %vm1522_vm6, %v1513_v32 }
 0x375   : > { %2484 = vmatmul.mubr.msk.bf16.gmra.mrb[8].mxu1 %vm1522_vm6, %v3178_v54  ;;  %v3264_v54 = vld [vmem:[%s3381_s7] ss:$0 sm:$0xff] }
 0x376   : > { %2487 = vmatprep.mubr.msk.bf16.mxu1 %vm1522_vm6, %v1513_v32 }
 0x378   : > { %2520 = vmatmul.mubr.msk.bf16.gmra.mrb[8].mxu0 %vm1522_vm6, %v1514_v48 }
 0x379   : > { %2523 = vmatprep.mubr.msk.bf16.mxu0 %vm1522_vm6, %v1690_v60 }
 0x37d   : > { %2488 = vmatmul.mubr.msk.bf16.gmra.mrb[12].mxu1 %vm1522_vm6, %v1514_v48 }
 0x380   : > { %2524 = vmatmul.mubr.msk.bf16.gmra.mrb[12].mxu0 %vm1522_vm6, %v1838_v27 }
 0x438   : > { %v2477_v9 = vpop.f32.mrb[0].mxu1 }
 0x439   : > { %v1656_v28 = vadd.f32 %v2477_v9, %v3264_v54  ;;  %v1585_v29 = vpop.f32.mrb[1].mxu1 }
 0x43a   : > { %v1654_v31 = vadd.f32 %v3264_v54, %v1585_v29  ;;  %v2478_v32 = vpop.f32.mrb[2].mxu1 }
 0x43b   : > { %v1657_v34 = vadd.f32 %v2478_v32, %v3264_v54  ;;  %v1588_v35 = vpop.f32.mrb[3].mxu1  ;;  %v2513_v36 = vpop.f32.mrb[0].mxu0 }
 0x43c   : > { %v1655_v37 = vadd.f32 %v3264_v54, %v1588_v35  ;;  %v2548_v38 = vadd.f32 %v2513_v36, %v1656_v28  ;;  %v1887_v39 = vpop.f32.mrb[1].mxu0 }
 0x43d   : > { %v2550_v40 = vadd.f32 %v1887_v39, %v1654_v31  ;;  %v2514_v41 = vpop.f32.mrb[2].mxu0 }
 0x43e   : > { %v2552_v42 = vadd.f32 %v2514_v41, %v1657_v34  ;;  %v1890_v43 = vpop.f32.mrb[3].mxu0  ;;  %v1968_v45 = vmax.f32 %v2548_v38, 0.0 }
 0x43f   : > { %v2554_v44 = vadd.f32 %v1890_v43, %v1655_v37  ;;  %v1966_v48 = vmax.f32 %v2550_v40, 0.0 }
 0x440   : > { %v1969_v46 = vmax.f32 %v2552_v42, 0.0  ;;  %v2481_v47 = vpop.f32.mrb[4].mxu1 }
 0x441   : > { %v1967_v49 = vmax.f32 %v2554_v44, 0.0  ;;  %v1660_v33 = vadd.f32 %v2481_v47, %v3264_v54  ;;  %v1601_v50 = vpop.f32.mrb[5].mxu1 }
 0x442   : > { %v1983_v51 = vpack.c.bf16 %v1969_v46, %v1968_v45  ;;  %v1658_v52 = vadd.f32 %v3264_v54, %v1601_v50  ;;  %v2482_v53 = vpop.f32.mrb[6].mxu1 }
 0x443   : > { %v1982_v55 = vpack.c.bf16 %v1967_v49, %v1966_v48  ;;  %v1661_v57 = vadd.f32 %v2482_v53, %v3264_v54  ;;  %v1604_v58 = vpop.f32.mrb[7].mxu1  ;;  %v2517_v59 = vpop.f32.mrb[4].mxu0 }
 0x444   : > { %v1659_v60 = vadd.f32 %v3264_v54, %v1604_v58  ;;  %v2556_v61 = vadd.f32 %v2517_v59, %v1660_v33  ;;  %v1903_v62 = vpop.f32.mrb[5].mxu0 }
 0x445   : > { %v2558_v63 = vadd.f32 %v1903_v62, %v1658_v52  ;;  %v2518_v11 = vpop.f32.mrb[6].mxu0  ;;  %2529 = vmatprep.mubr.msk.bf16.mxu1 %vm717_vm1, %v1982_v55 }
 0x446   : > { %v2560_v12 = vadd.f32 %v2518_v11, %v1661_v57  ;;  %v1906_v13 = vpop.f32.mrb[7].mxu0  ;;  %2530 = vmatmul.mubr.msk.bf16.vlgmr.msra.gmra.mrb[16].mxu1 %vm717_vm1, %v1983_v51  ;;  %v1972_v15 = vmax.f32 %v2556_v61, 0.0 }
 0x447   : > { %v2562_v14 = vadd.f32 %v1906_v13, %v1659_v60  ;;  %v1970_v10 = vmax.f32 %v2558_v63, 0.0  ;;  %v2125_v63 = vunpack.c.l.bf16 %v2936_v3 }
 0x448   : > { %v1973_v16 = vmax.f32 %v2560_v12, 0.0  ;;  %v2485_v17 = vpop.f32.mrb[8].mxu1  ;;  %v2123_v12 = vunpack.c.l.bf16 %v2932_v1 }
 0x449   : > { %v1971_v19 = vmax.f32 %v2562_v14, 0.0  ;;  %v1664_v25 = vadd.f32 %v2485_v17, %v3264_v54  ;;  %v1617_v30 = vpop.f32.mrb[9].mxu1 }
 0x44a   : > { %v1985_v18 = vpack.c.bf16 %v1973_v16, %v1972_v15  ;;  %v1662_v20 = vadd.f32 %v3264_v54, %v1617_v30  ;;  %v2486_v21 = vpop.f32.mrb[10].mxu1  ;;  %v2126_v15 = vunpack.c.h.bf16 %v2936_v3 }
 0x44b   : > { %v1984_v24 = vpack.c.bf16 %v1971_v19, %v1970_v10  ;;  %v1665_v22 = vadd.f32 %v2486_v21, %v3264_v54  ;;  %v1620_v56 = vpop.f32.mrb[11].mxu1  ;;  %v2521_v23 = vpop.f32.mrb[8].mxu0  ;;  %v2124_v10 = vunpack.c.h.bf16 %v2932_v1 }
 0x44c   : > { %v1663_v0 = vadd.f32 %v3264_v54, %v1620_v56  ;;  %v2564_v26 = vadd.f32 %v2521_v23, %v1664_v25  ;;  %v1919_v27 = vpop.f32.mrb[9].mxu0  ;;  %v2129_v23 = vunpack.c.l.bf16 %v2956_v7 }
 0x44d   : > { %v2566_v9 = vadd.f32 %v1919_v27, %v1662_v20  ;;  %v2522_v28 = vpop.f32.mrb[10].mxu0  ;;  %2533 = vmatprep.mubr.msk.bf16.mxu1 %vm717_vm1, %v1984_v24 }
 0x44e   : > { %v2568_v29 = vadd.f32 %v2522_v28, %v1665_v22  ;;  %v1922_v31 = vpop.f32.mrb[11].mxu0  ;;  %2534 = vmatmul.mubr.msk.bf16.gmra.mrb[20].mxu1 %vm717_vm1, %v1985_v18  ;;  %v1976_v34 = vmax.f32 %v2564_v26, 0.0  ;;  %v2127_v26 = vunpack.c.l.bf16 %v2940_v5  ;;  %v2130_v28 = vunpack.c.h.bf16 %v2956_v7 }
 0x44f   : > { %v2570_v32 = vadd.f32 %v1922_v31, %v1663_v0  ;;  %v1974_v37 = vmax.f32 %v2566_v9, 0.0 }
 0x450   : > { %v1977_v35 = vmax.f32 %v2568_v29, 0.0  ;;  %v2489_v36 = vpop.f32.mrb[12].mxu1 }
 0x451   : > { %v1975_v38 = vmax.f32 %v2570_v32, 0.0  ;;  %v1668_v39 = vadd.f32 %v2489_v36, %v3264_v54  ;;  %v1633_v40 = vpop.f32.mrb[13].mxu1  ;;  %v2128_v32 = vunpack.c.h.bf16 %v2940_v5 }
 0x452   : > { %v1987_v41 = vpack.c.bf16 %v1977_v35, %v1976_v34  ;;  %v1666_v42 = vadd.f32 %v3264_v54, %v1633_v40  ;;  %v2490_v43 = vpop.f32.mrb[14].mxu1 }
 0x453   : > { %v1986_v44 = vpack.c.bf16 %v1975_v38, %v1974_v37  ;;  %v1669_v45 = vadd.f32 %v2490_v43, %v3264_v54  ;;  %v1636_v46 = vpop.f32.mrb[15].mxu1  ;;  %v2525_v47 = vpop.f32.mrb[12].mxu0  ;;  %v2133_v43 = vunpack.c.l.bf16 %v2938_v4 }
 0x454   : > { %v1667_v48 = vadd.f32 %v3264_v54, %v1636_v46  ;;  %v2572_v49 = vadd.f32 %v2525_v47, %v1668_v39  ;;  %v1935_v33 = vpop.f32.mrb[13].mxu0  ;;  %v3293_v54 = vld [vmem:[%s3382_s8] ss:$0 sm:$0xff] }
 0x455   : > { %v2574_v50 = vadd.f32 %v1935_v33, %v1666_v42  ;;  %v2526_v51 = vpop.f32.mrb[14].mxu0  ;;  %2537 = vmatprep.mubr.msk.bf16.mxu1 %vm717_vm1, %v1986_v44 }
 0x456   : > { %v2576_v52 = vadd.f32 %v2526_v51, %v1669_v45  ;;  %v1938_v53 = vpop.f32.mrb[15].mxu0  ;;  %2538 = vmatmul.mubr.msk.bf16.gmra.mrb[24].mxu1 %vm717_vm1, %v1987_v41  ;;  %v1980_v57 = vmax.f32 %v2572_v49, 0.0  ;;  %v2131_v45 = vunpack.c.l.bf16 %v2934_v2 }
 0x457   : > { %v2578_v55 = vadd.f32 %v1938_v53, %v1667_v48  ;;  %v1978_v59 = vmax.f32 %v2574_v50, 0.0  ;;  %v2134_v48 = vunpack.c.h.bf16 %v2938_v4  ;;  %v2132_v50 = vunpack.c.h.bf16 %v2934_v2 }
 0x458   : > { %v1981_v58 = vmax.f32 %v2576_v52, 0.0 }
 0x459   : > { %v1979_v60 = vmax.f32 %v2578_v55, 0.0 }
 0x45a   : > { %v1989_v61 = vpack.c.bf16 %v1981_v58, %v1980_v57 }
 0x45b   : > { %v1988_v62 = vpack.c.bf16 %v1979_v60, %v1978_v59 }
 0x45d   : > { %2541 = vmatprep.mubr.msk.bf16.mxu1 %vm717_vm1, %v1988_v62  ;;  %v2137_v62 = vunpack.c.l.bf16 %v2958_v8 }
 0x45e   : > { %2542 = vmatmul.mubr.msk.bf16.gmra.mrb[28].mxu1 %vm717_vm1, %v1989_v61 }
 0x519   : > { %v2531_v11 = vpop.f32.mrb[16].mxu1 }
 0x51a   : > { %v2069_v13 = vadd.f32 %v2531_v11, %v3293_v54  ;;  %v2060_v14 = vpop.f32.mrb[17].mxu1  ;;  %v2135_v11 = vunpack.c.l.bf16 %v2942_v6 }
 0x51b   : > { %v2061_v16 = vadd.f32 %v3293_v54, %v2060_v14  ;;  %v2532_v17 = vpop.f32.mrb[18].mxu1  ;;  %v2138_v14 = vunpack.c.h.bf16 %v2958_v8 }
 0x51c   : > { %v2141_v19 = vadd.f32 %v2125_v63, %v2069_v13  ;;  %v2072_v25 = vadd.f32 %v2532_v17, %v3293_v54  ;;  %v2063_v30 = vpop.f32.mrb[19].mxu1  ;;  %v2136_v17 = vunpack.c.h.bf16 %v2942_v6 }
 0x51d   : > { %v2139_v18 = vadd.f32 %v2123_v12, %v2061_v16  ;;  %v2064_v20 = vadd.f32 %v3293_v54, %v2063_v30 }
 0x51e   : > { %v2157_v21 = vmax.f32 %v2141_v19, 0.0  ;;  %v2142_v24 = vadd.f32 %v2126_v15, %v2072_v25 }
 0x51f   : > { %v2155_v22 = vmax.f32 %v2139_v18, 0.0  ;;  %v2140_v56 = vadd.f32 %v2124_v10, %v2064_v20 }
 0x520   : > { %2173 = vst.msk [vmem:[%s2930_s14 + $0x10] sm:$0xff] %vm579_vm0, %v2157_v21  ;;  %v2158_v3 = vmax.f32 %v2142_v24, 0.0 }
 0x521   : > { %2171 = vst.msk [vmem:[%s2930_s14] sm:$0xff] %vm579_vm0, %v2155_v22  ;;  %v2156_v1 = vmax.f32 %v2140_v56, 0.0  ;;  %v2535_v0 = vpop.f32.mrb[20].mxu1 }
 0x522   : > { %2174 = vst.msk [vmem:[%s2930_s14 + $0x18] sm:$0xff] %vm579_vm0, %v2158_v3  ;;  %v2085_v27 = vadd.f32 %v2535_v0, %v3293_v54  ;;  %v2076_v9 = vpop.f32.mrb[21].mxu1 }
 0x523   : > { %2172 = vst.msk [vmem:[%s2930_s14 + $0x8] sm:$0xff] %vm579_vm0, %v2156_v1  ;;  %v2077_v29 = vadd.f32 %v3293_v54, %v2076_v9  ;;  %v2536_v31 = vpop.f32.mrb[22].mxu1 }
 0x524   : > { %v2145_v34 = vadd.f32 %v2129_v23, %v2085_v27  ;;  %v2088_v35 = vadd.f32 %v2536_v31, %v3293_v54  ;;  %v2079_v36 = vpop.f32.mrb[23].mxu1 }
 0x525   : > { %v2143_v37 = vadd.f32 %v2127_v26, %v2077_v29  ;;  %v2080_v38 = vadd.f32 %v3293_v54, %v2079_v36 }
 0x526   : > { %v2161_v39 = vmax.f32 %v2145_v34, 0.0  ;;  %v2146_v40 = vadd.f32 %v2130_v28, %v2088_v35 }
 0x527   : > { %v2159_v7 = vmax.f32 %v2143_v37, 0.0  ;;  %v2144_v41 = vadd.f32 %v2128_v32, %v2080_v38 }
 0x528   : > { %2177 = vst.msk [vmem:[%s2930_s14 + $0x30] sm:$0xff] %vm579_vm0, %v2161_v39  ;;  %v2162_v42 = vmax.f32 %v2146_v40, 0.0 }
 0x529   : > { %2175 = vst.msk [vmem:[%s2930_s14 + $0x20] sm:$0xff] %vm579_vm0, %v2159_v7  ;;  %v2160_v5 = vmax.f32 %v2144_v41, 0.0  ;;  %v2539_v44 = vpop.f32.mrb[24].mxu1 }
 0x52a   : > { %2178 = vst.msk [vmem:[%s2930_s14 + $0x38] sm:$0xff] %vm579_vm0, %v2162_v42  ;;  %v2101_v46 = vadd.f32 %v2539_v44, %v3293_v54  ;;  %v2092_v47 = vpop.f32.mrb[25].mxu1 }
 0x52b   : > { %2176 = vst.msk [vmem:[%s2930_s14 + $0x28] sm:$0xff] %vm579_vm0, %v2160_v5  ;;  %v2093_v49 = vadd.f32 %v3293_v54, %v2092_v47  ;;  %v2540_v33 = vpop.f32.mrb[26].mxu1 }
 0x52c   : > { %v2149_v51 = vadd.f32 %v2133_v43, %v2101_v46  ;;  %v2104_v52 = vadd.f32 %v2540_v33, %v3293_v54  ;;  %v2095_v53 = vpop.f32.mrb[27].mxu1 }
 0x52d   : > { %v2147_v55 = vadd.f32 %v2131_v45, %v2093_v49  ;;  %v2096_v57 = vadd.f32 %v3293_v54, %v2095_v53 }
 0x52e   : > { %v2165_v58 = vmax.f32 %v2149_v51, 0.0  ;;  %v2150_v59 = vadd.f32 %v2134_v48, %v2104_v52 }
 0x52f   : > { %v2163_v4 = vmax.f32 %v2147_v55, 0.0  ;;  %v2148_v60 = vadd.f32 %v2132_v50, %v2096_v57 }
 0x530   : > { %2181 = vst.msk [vmem:[%s2930_s14 + $0x50] sm:$0xff] %vm579_vm0, %v2165_v58  ;;  %v2166_v61 = vmax.f32 %v2150_v59, 0.0 }
 0x531   : > { %2179 = vst.msk [vmem:[%s2930_s14 + $0x40] sm:$0xff] %vm579_vm0, %v2163_v4  ;;  %v2164_v2 = vmax.f32 %v2148_v60, 0.0  ;;  %v2543_v63 = vpop.f32.mrb[28].mxu1 }
 0x532   : > { %2182 = vst.msk [vmem:[%s2930_s14 + $0x58] sm:$0xff] %vm579_vm0, %v2166_v61  ;;  %v2117_v12 = vadd.f32 %v2543_v63, %v3293_v54  ;;  %v2108_v13 = vpop.f32.mrb[29].mxu1 }
 0x533   : > { %2180 = vst.msk [vmem:[%s2930_s14 + $0x48] sm:$0xff] %vm579_vm0, %v2164_v2  ;;  %v2109_v15 = vadd.f32 %v3293_v54, %v2108_v13  ;;  %v2544_v16 = vpop.f32.mrb[30].mxu1 }
 0x534   : > { %v2153_v10 = vadd.f32 %v2137_v62, %v2117_v12  ;;  %v2120_v19 = vadd.f32 %v2544_v16, %v3293_v54  ;;  %v2111_v25 = vpop.f32.mrb[31].mxu1 }
 0x535   : > { %v2151_v30 = vadd.f32 %v2135_v11, %v2109_v15  ;;  %v2112_v18 = vadd.f32 %v3293_v54, %v2111_v25 }
 0x536   : > { %v2169_v20 = vmax.f32 %v2153_v10, 0.0  ;;  %v2154_v21 = vadd.f32 %v2138_v14, %v2120_v19 }
 0x537   : > { %v2167_v8 = vmax.f32 %v2151_v30, 0.0  ;;  %v2152_v24 = vadd.f32 %v2136_v17, %v2112_v18 }
 0x538   : > { %2185 = vst.msk [vmem:[%s2930_s14 + $0x70] sm:$0xff] %vm579_vm0, %v2169_v20  ;;  %v2170_v22 = vmax.f32 %v2154_v21, 0.0 }
 0x539   : > { %2183 = vst.msk [vmem:[%s2930_s14 + $0x60] sm:$0xff] %vm579_vm0, %v2167_v8  ;;  %v2168_v56 = vmax.f32 %v2152_v24, 0.0 }
 0x53a   : > { %2186 = vst.msk [vmem:[%s2930_s14 + $0x78] sm:$0xff] %vm579_vm0, %v2170_v22 }
 0x53b   : > { %2184 = vst.msk [vmem:[%s2930_s14 + $0x68] sm:$0xff] %vm579_vm0, %v2168_v56 }
 0x53c PF: > { %s19_s13 = sadd.s32 1, %s2807_s13   ;;  %s3416_s27 = sld [smem:[#allocation3_spill]] }
 0x53d   : > { %p16_p0 = scmp.ge.s32.totalorder %s19_s13, 6   ;;  %s3417_s26 = sld [smem:[#allocation4_spill]] }
 0x53e   : > { %s3418_s30 = smov %s2799_s11  ;;  %s3419_s10 = smov %s2803_s12 }
 0x53f   :  { %18 = sbr.rel (!%p16_p0) target bundleno = 3 (0x3), region = 110 }
 0x542   : > { %s3420_s11 = smov %s3416_s27 }
 0x543   : > { %s3421_s12 = smov %s3417_s26 }

</bundles_post_ra>
